<compile_context>
chip_gen: v7x
topology: tpu7x:2x2x1
jax: 0.10.0
libtpu: 0.0.40
codegen_flags: <defaults>
</compile_context>

<pallas_src>
import jax
import jax.numpy as jnp
from jax.experimental import pallas as pl
from jax.experimental.pallas import tpu as pltpu


TN = 512  # output-column tile (lane-dense, multiple of 128)


# ----------------------------------------------------------------------------
# Fused kernel: inner denoiser (both CFG halves, shared x@Wx) + CFG blend
# ----------------------------------------------------------------------------
def _cfg_denoiser_kernel(scale_ref, xbf_ref, xskip_ref, uc_ref, sigma_ref,
                         wx_ref, wc_ref, b_ref, o_ref):
    # scale_ref : (1,)        SMEM   cond_scale
    # xbf_ref   : (Bp, D)     VMEM   bf16 flattened latents (resident, 1-buffered)
    # xskip_ref : (Bp, TN)    VMEM   f32 column tile of x for the skip connection
    # uc_ref    : (2*Bp, SE)  VMEM   bf16 stacked [uncond; cond] (resident, 1-buf)
    # sigma_ref : (Bp, 1)     VMEM   noise level per batch row (resident, 1-buf)
    # wx_ref    : (D, TN)     VMEM   bf16 weight column tile
    # wc_ref    : (SE, TN)    VMEM   bf16 weight column tile
    # b_ref     : (1, TN)     VMEM   f32 bias tile
    # o_ref     : (Bp, TN)    VMEM   f32 output tile
    bp = xskip_ref.shape[0]

    # x@Wx computed once per tile, shared by both CFG halves; bias folded in.
    base = jnp.dot(xbf_ref[...], wx_ref[...],
                   preferred_element_type=jnp.float32) + b_ref[...]     # (Bp, TN)

    # One fused matmul for both conditioning halves (rows stacked in the wrapper).
    h_uc = jnp.dot(uc_ref[...], wc_ref[...],
                   preferred_element_type=jnp.float32)                  # (2*Bp, TN)
    h_u = base + h_uc[:bp]
    h_c = base + h_uc[bp:]

    sigma = sigma_ref[...]                                              # (Bp, 1)
    c_skip = 1.0 / (sigma * sigma + 1.0)
    c_out = sigma * jax.lax.rsqrt(sigma * sigma + 1.0)

    s = scale_ref[0]
    t_u = jnp.tanh(h_u)
    t_c = jnp.tanh(h_c)
    # Algebraically exact CFG fold: c_skip*x + c_out*(t_u + (t_c - t_u)*s)
    #   == u + (c - u)*s  because both halves share x and sigma.
    blend = t_u + (t_c - t_u) * s

    o_ref[...] = c_skip * xskip_ref[...] + c_out * blend


# ----------------------------------------------------------------------------
# CFGDenoiser forward (wrapper: flatten / pad / cast only; compute in kernel)
# ----------------------------------------------------------------------------
def cfg_denoiser_forward(x, sigma, uncond, cond, cond_scale, params):
    """x: (B, C, H, W) NCHW; sigma: (B,); uncond/cond: (B, S, E)."""
    wx, wc, b_param = params
    B = x.shape[0]
    D = wx.shape[0]
    SE = wc.shape[0]

    tn = min(TN, D)
    # Loud tiling checks (128-lane / block divisibility assumptions).
    assert tn % 128 == 0, "TN must be a multiple of 128"
    assert D % tn == 0, "D must be a multiple of the column tile"
    assert D % 128 == 0, "D must be a multiple of 128"
    assert SE % 128 == 0, "SE must be a multiple of 128"

    x_flat = x.reshape(B, -1).astype(jnp.float32)            # (B, D)
    u_flat = uncond.reshape(B, -1).astype(jnp.float32)       # (B, SE)
    c_flat = cond.reshape(B, -1).astype(jnp.float32)         # (B, SE)
    sig_col = sigma.reshape(B, 1).astype(jnp.float32)        # (B, 1)

    # Pad batch rows to a full sublane (8) so loads/stores are unmasked.
    Bp = ((B + 7) // 8) * 8
    pad = Bp - B
    if pad:
        x_flat = jnp.pad(x_flat, ((0, pad), (0, 0)))
        u_flat = jnp.pad(u_flat, ((0, pad), (0, 0)))
        c_flat = jnp.pad(c_flat, ((0, pad), (0, 0)))
        sig_col = jnp.pad(sig_col, ((0, pad), (0, 0)))

    # Hoisted bf16 casts: done once here, not per grid step inside the kernel.
    x_bf16 = x_flat.astype(jnp.bfloat16)                                  # (Bp, D)
    # cat([uncond, cond]) as in the original module -> one fused Wc matmul.
    uc_bf16 = jnp.concatenate([u_flat, c_flat], axis=0).astype(jnp.bfloat16)  # (2Bp, SE)

    scale_arr = jnp.asarray([cond_scale], dtype=jnp.float32)

    cost = pl.CostEstimate(
        flops=2 * Bp * D * D + 2 * (2 * Bp) * SE * D,
        transcendentals=2 * Bp * D,                    # tanh on both CFG halves
        bytes_accessed=(D * D + SE * D) * 2            # bf16 weight stream (dominant)
                       + Bp * D * (2 + 4)              # x bf16 + f32 skip
                       + 2 * Bp * SE * 2               # stacked conds bf16
                       + Bp * D * 4,                   # f32 output
    )

    out = pl.pallas_call(
        _cfg_denoiser_kernel,
        out_shape=jax.ShapeDtypeStruct((Bp, D), jnp.float32),
        grid=(D // tn,),
        in_specs=[
            pl.BlockSpec(memory_space=pltpu.SMEM),                    # cond_scale
            pl.BlockSpec((Bp, D), lambda j: (0, 0),
                         pipeline_mode=pl.Buffered(1)),               # x bf16 (resident)
            pl.BlockSpec((Bp, tn), lambda j: (0, j)),                 # x skip tile (f32)
            pl.BlockSpec((2 * Bp, SE), lambda j: (0, 0),
                         pipeline_mode=pl.Buffered(1)),               # [uncond; cond] bf16
            pl.BlockSpec((Bp, 1), lambda j: (0, 0),
                         pipeline_mode=pl.Buffered(1)),               # sigma (resident)
            pl.BlockSpec((D, tn), lambda j: (0, j)),                  # Wx column tile (bf16)
            pl.BlockSpec((SE, tn), lambda j: (0, j)),                 # Wc column tile (bf16)
            pl.BlockSpec((1, tn), lambda j: (0, j)),                  # bias tile (f32)
        ],
        out_specs=pl.BlockSpec((Bp, tn), lambda j: (0, j)),
        compiler_params=pltpu.CompilerParams(
            # Independent output-column tiles: sharded across both TCs on v7x,
            # neutral on v5e/v6e.
            dimension_semantics=("parallel",),
        ),
        cost_estimate=cost,
    )(scale_arr, x_bf16, x_flat, uc_bf16, sig_col, wx, wc, b_param)

    return out[:B].reshape(x.shape)                                   # back to NCHW


def make_params(key, d, se):
    kx, kc, kb = jax.random.split(key, 3)
    wx = (jax.random.normal(kx, (d, d), dtype=jnp.float32) / jnp.sqrt(d)).astype(jnp.bfloat16)
    wc = (jax.random.normal(kc, (se, d), dtype=jnp.float32) / jnp.sqrt(se)).astype(jnp.bfloat16)
    b = (jax.random.normal(kb, (1, d), dtype=jnp.float32) * 0.01).astype(jnp.float32)
    return wx, wc, b


if __name__ == "__main__":
    B, C, H, W = 2, 4, 16, 16       # latent, NCHW
    S, E = 8, 32                    # conditioning tokens / hidden
    D = C * H * W                   # 1024
    SE = S * E                      # 256

    key = jax.random.PRNGKey(0)
    k1, k2, k3, k4, kp = jax.random.split(key, 5)
    x = jax.random.normal(k1, (B, C, H, W), dtype=jnp.float32)
    sigma = jnp.abs(jax.random.normal(k2, (B,), dtype=jnp.float32)) + 0.5
    uncond = jax.random.normal(k3, (B, S, E), dtype=jnp.float32)
    cond = jax.random.normal(k4, (B, S, E), dtype=jnp.float32)
    cond_scale = 7.5

    params = make_params(kp, D, SE)

    out = cfg_denoiser_forward(x, sigma, uncond, cond, cond_scale, params)
    out = jax.block_until_ready(out)

    # Pure-JAX reference (original CFG structure: two inner-model halves + blend),
    # with the same bf16 weight/activation casts the kernel's MXU path uses.
    def ref_forward(x, sigma, uncond, cond, cond_scale, params):
        wx, wc, b = params
        wx32 = wx.astype(jnp.float32)
        wc32 = wc.astype(jnp.float32)
        Bn = x.shape[0]
        xf = x.reshape(Bn, -1).astype(jnp.float32)
        sg = sigma.reshape(Bn, 1).astype(jnp.float32)
        uf = uncond.reshape(Bn, -1).astype(jnp.float32)
        cf = cond.reshape(Bn, -1).astype(jnp.float32)

        def inner(xi, ci):
            h = (xi.astype(jnp.bfloat16).astype(jnp.float32) @ wx32
                 + ci.astype(jnp.bfloat16).astype(jnp.float32) @ wc32 + b)
            c_skip = 1.0 / (sg * sg + 1.0)
            c_out = sg / jnp.sqrt(sg * sg + 1.0)
            return c_skip * xi + c_out * jnp.tanh(h)

        u = inner(xf, uf)                                   # uncond half
        c = inner(xf, cf)                                   # cond half
        return (u + (c - u) * cond_scale).reshape(x.shape)

    out_ref = ref_forward(x, sigma, uncond, cond, cond_scale, params)

    assert out.shape == x.shape and out.dtype == jnp.float32
    assert jnp.allclose(out, out_ref, atol=2e-3, rtol=2e-3), "mismatch vs reference"

    print("KERNEL_OK")
</pallas_src>

<mosaic_0001>
module attributes {stable_mosaic.version = 11 : i64} {
  func.func @_cfg_denoiser_kernel(%arg0: i32, %arg1: memref<1xf32, #tpu.memory_space<smem>>, %arg2: memref<8x1024xbf16, #tpu.memory_space<vmem>>, %arg3: memref<8x512xf32, #tpu.memory_space<vmem>>, %arg4: memref<16x256xbf16, #tpu.memory_space<vmem>>, %arg5: memref<8x1xf32, #tpu.memory_space<vmem>>, %arg6: memref<1024x512xbf16, #tpu.memory_space<vmem>>, %arg7: memref<256x512xbf16, #tpu.memory_space<vmem>>, %arg8: memref<1x512xf32, #tpu.memory_space<vmem>>, %arg9: memref<8x512xf32, #tpu.memory_space<vmem>>) attributes {dimension_semantics = [#tpu.dimension_semantics<parallel>], iteration_bounds = array<i64: 2>, scalar_prefetch = 0 : i64, scratch_operands = 0 : i64, tpu.core_type = #tpu.core_type<tc>, window_params = [{transform_indices = @transform_0, window_bounds = array<i64: 1>}, {pipeline_mode = #tpu.pipeline_mode<synchronous>, transform_indices = @transform_1, window_bounds = array<i64: 8, 1024>}, {transform_indices = @transform_2, window_bounds = array<i64: 8, 512>}, {pipeline_mode = #tpu.pipeline_mode<synchronous>, transform_indices = @transform_3, window_bounds = array<i64: 16, 256>}, {pipeline_mode = #tpu.pipeline_mode<synchronous>, transform_indices = @transform_4, window_bounds = array<i64: 8, 1>}, {transform_indices = @transform_5, window_bounds = array<i64: 1024, 512>}, {transform_indices = @transform_6, window_bounds = array<i64: 256, 512>}, {transform_indices = @transform_7, window_bounds = array<i64: 1, 512>}, {transform_indices = @transform_8, window_bounds = array<i64: 8, 512>}]} {
    %c0 = arith.constant 0 : index
    %c0_0 = arith.constant 0 : index
    %0 = vector.load %arg2[%c0, %c0_0] : memref<8x1024xbf16, #tpu.memory_space<vmem>>, vector<8x1024xbf16>
    %c0_1 = arith.constant 0 : index
    %c0_2 = arith.constant 0 : index
    %1 = vector.load %arg6[%c0_1, %c0_2] : memref<1024x512xbf16, #tpu.memory_space<vmem>>, vector<1024x512xbf16>
    %cst = arith.constant dense<0.000000e+00> : vector<8x512xf32>
    %2 = tpu.matmul %0, %1, %cst {dimension_numbers = #tpu.dot_dimension_numbers<[1], [0], [0], [1], [0, 0, 1, 1], [], []>} : vector<8x1024xbf16>, vector<1024x512xbf16>, vector<8x512xf32> -> vector<8x512xf32>
    %c0_3 = arith.constant 0 : index
    %c0_4 = arith.constant 0 : index
    %3 = vector.load %arg8[%c0_3, %c0_4] : memref<1x512xf32, #tpu.memory_space<vmem>>, vector<1x512xf32>
    %4 = vector.broadcast %3 : vector<1x512xf32> to vector<8x512xf32>
    %5 = arith.addf %2, %4 : vector<8x512xf32>
    %c0_5 = arith.constant 0 : index
    %c0_6 = arith.constant 0 : index
    %6 = vector.load %arg4[%c0_5, %c0_6] : memref<16x256xbf16, #tpu.memory_space<vmem>>, vector<16x256xbf16>
    %c0_7 = arith.constant 0 : index
    %c0_8 = arith.constant 0 : index
    %7 = vector.load %arg7[%c0_7, %c0_8] : memref<256x512xbf16, #tpu.memory_space<vmem>>, vector<256x512xbf16>
    %cst_9 = arith.constant dense<0.000000e+00> : vector<16x512xf32>
    %8 = tpu.matmul %6, %7, %cst_9 {dimension_numbers = #tpu.dot_dimension_numbers<[1], [0], [0], [1], [0, 0, 1, 1], [], []>} : vector<16x256xbf16>, vector<256x512xbf16>, vector<16x512xf32> -> vector<16x512xf32>
    %9 = vector.extract_strided_slice %8 {offsets = [0, 0], sizes = [8, 512], strides = [1, 1]} : vector<16x512xf32> to vector<8x512xf32>
    %10 = arith.addf %5, %9 : vector<8x512xf32>
    %11 = vector.extract_strided_slice %8 {offsets = [8, 0], sizes = [8, 512], strides = [1, 1]} : vector<16x512xf32> to vector<8x512xf32>
    %12 = arith.addf %5, %11 : vector<8x512xf32>
    %c0_10 = arith.constant 0 : index
    %c0_11 = arith.constant 0 : index
    %13 = vector.load %arg5[%c0_10, %c0_11] : memref<8x1xf32, #tpu.memory_space<vmem>>, vector<8x1xf32>
    %14 = arith.mulf %13, %13 : vector<8x1xf32>
    %cst_12 = arith.constant 1.000000e+00 : f32
    %15 = vector.broadcast %cst_12 : f32 to vector<8x1xf32>
    %16 = arith.addf %14, %15 : vector<8x1xf32>
    %cst_13 = arith.constant 1.000000e+00 : f32
    %17 = vector.broadcast %cst_13 : f32 to vector<8x1xf32>
    %18 = arith.divf %17, %16 : vector<8x1xf32>
    %19 = arith.mulf %13, %13 : vector<8x1xf32>
    %cst_14 = arith.constant 1.000000e+00 : f32
    %20 = vector.broadcast %cst_14 : f32 to vector<8x1xf32>
    %21 = arith.addf %19, %20 : vector<8x1xf32>
    %22 = math.rsqrt %21 : vector<8x1xf32>
    %23 = arith.mulf %13, %22 : vector<8x1xf32>
    %c0_15 = arith.constant 0 : index
    %24 = memref.load %arg1[%c0_15] : memref<1xf32, #tpu.memory_space<smem>>
    %25 = math.tanh %10 : vector<8x512xf32>
    %26 = math.tanh %12 : vector<8x512xf32>
    %27 = arith.subf %26, %25 : vector<8x512xf32>
    %28 = vector.broadcast %24 : f32 to vector<8x512xf32>
    %29 = arith.mulf %27, %28 : vector<8x512xf32>
    %30 = arith.addf %25, %29 : vector<8x512xf32>
    %c0_16 = arith.constant 0 : index
    %c0_17 = arith.constant 0 : index
    %31 = vector.load %arg3[%c0_16, %c0_17] : memref<8x512xf32, #tpu.memory_space<vmem>>, vector<8x512xf32>
    %32 = vector.broadcast %18 : vector<8x1xf32> to vector<8x512xf32>
    %33 = arith.mulf %32, %31 : vector<8x512xf32>
    %34 = vector.broadcast %23 : vector<8x1xf32> to vector<8x512xf32>
    %35 = arith.mulf %34, %30 : vector<8x512xf32>
    %36 = arith.addf %33, %35 : vector<8x512xf32>
    %c0_18 = arith.constant 0 : index
    %c0_19 = arith.constant 0 : index
    %37 = vector.load %arg9[%c0_18, %c0_19] : memref<8x512xf32, #tpu.memory_space<vmem>>, vector<8x512xf32>
    tpu.vector_store %arg9[%c0_18, %c0_19], %36 {strides = array<i32>} : memref<8x512xf32, #tpu.memory_space<vmem>>, vector<8x512xf32>,
    return
  }
  func.func @transform_0(%arg0: i32) -> i32 {
    %c0_i32 = arith.constant 0 : i32
    %c0_i32_0 = arith.constant 0 : i32
    return %c0_i32 : i32
  }
  func.func @transform_1(%arg0: i32) -> (i32, i32) {
    %c0_i32 = arith.constant 0 : i32
    %c0_i32_0 = arith.constant 0 : i32
    %c0_i32_1 = arith.constant 0 : i32
    return %c0_i32, %c0_i32_0 : i32, i32
  }
  func.func @transform_2(%arg0: i32) -> (i32, i32) {
    %c0_i32 = arith.constant 0 : i32
    %c0_i32_0 = arith.constant 0 : i32
    return %c0_i32, %arg0 : i32, i32
  }
  func.func @transform_3(%arg0: i32) -> (i32, i32) {
    %c0_i32 = arith.constant 0 : i32
    %c0_i32_0 = arith.constant 0 : i32
    %c0_i32_1 = arith.constant 0 : i32
    return %c0_i32, %c0_i32_0 : i32, i32
  }
  func.func @transform_4(%arg0: i32) -> (i32, i32) {
    %c0_i32 = arith.constant 0 : i32
    %c0_i32_0 = arith.constant 0 : i32
    %c0_i32_1 = arith.constant 0 : i32
    return %c0_i32, %c0_i32_0 : i32, i32
  }
  func.func @transform_5(%arg0: i32) -> (i32, i32) {
    %c0_i32 = arith.constant 0 : i32
    %c0_i32_0 = arith.constant 0 : i32
    return %c0_i32, %arg0 : i32, i32
  }
  func.func @transform_6(%arg0: i32) -> (i32, i32) {
    %c0_i32 = arith.constant 0 : i32
    %c0_i32_0 = arith.constant 0 : i32
    return %c0_i32, %arg0 : i32, i32
  }
  func.func @transform_7(%arg0: i32) -> (i32, i32) {
    %c0_i32 = arith.constant 0 : i32
    %c0_i32_0 = arith.constant 0 : i32
    return %c0_i32, %arg0 : i32, i32
  }
  func.func @transform_8(%arg0: i32) -> (i32, i32) {
    %c0_i32 = arith.constant 0 : i32
    %c0_i32_0 = arith.constant 0 : i32
    return %c0_i32, %arg0 : i32, i32
  }
}

</mosaic_0001>

<bundles_post_ra>
// kernel: tpu_custom_call.1
= control target key start
LH: loop header
LB: loop body
LE: loop exit
PB: predicated region body
PF: predicated region fallthrough
CT: control target
= control target key end

     0   :  { %s5130_s0 = inlined_call_operand.<no memory space> [shape: f32[1], index: 0, kind: input, shape index: {}]   ;;  %s5131_s1 = inlined_call_operand.hbm [shape: bf16[8,1024], index: 1, kind: input, shape index: {}]   ;;  %s5132_s2 = inlined_call_operand.hbm [shape: f32[8,1024], index: 2, kind: input, shape index: {}]   ;;  %s5133_s3 = inlined_call_operand.hbm [shape: bf16[16,256], index: 3, kind: input, shape index: {}]   ;;  %s5134_s4 = inlined_call_operand.vmem [shape: f32[8,1], index: 4, kind: input, shape index: {}]   ;;  %s5135_s5 = inlined_call_operand.hbm [shape: bf16[1024,1024], index: 5, kind: input, shape index: {}]   ;;  %s5136_s6 = inlined_call_operand.hbm [shape: bf16[256,1024], index: 6, kind: input, shape index: {}]   ;;  %s5137_s7 = inlined_call_operand.hbm [shape: f32[1,1024], index: 7, kind: input, shape index: {}]   ;;  %s5138_s8 = inlined_call_operand.hbm [shape: f32[8,1024], index: 8, kind: output, shape index: {}]  }
   0x1   :  { %5160 = sst [smem:[#allocation27_spill]] %s5133_s3 }
   0x2   :  { %5161 = sst [smem:[#allocation28_spill]] %s5134_s4 }
   0x3   :  { %5162 = sst [smem:[#allocation29_spill]] %s5135_s5 }
   0x4   :  { %5163 = sst [smem:[#allocation30_spill]] %s5138_s8 }
   0x5   :  { %13 = sst [smem:[#allocation2]] %s5130_s0 }
   0x6   :  { %14 = vsyncpa [#allocation4], 0 }
   0x7   :  { %15 = vsyncpa [#allocation7], 0 }
   0x8   :  { %17 = vsyncpa [#allocation7 + $0x1], 0 }
   0x9   :  { %18 = vsyncpa [#allocation10], 0 }
   0xa   :  { %20 = vsyncpa [#allocation10 + $0x1], 0 }
   0xb   :  { %21 = vsyncpa [#allocation13], 0 }
   0xc   :  { %23 = vsyncpa [#allocation13 + $0x1], 0 }
   0xd   :  { %24 = vsyncpa [#allocation5], 0 }
   0xe   :  { %26 = vsyncpa [#allocation5 + $0x1], 0  ;;  %s4423_s29 = smov 0   ;;  %s4425_s30 = smov 0  }
   0xf   :  { %s4427_s9 = smov 0   ;;  %s4429_s10 = smov 0  }
  0x10 LB: > { %5164 = sst [smem:[#allocation21_spill]] %s4348_s29  ;;  %s4444_s0 = sadd.s32 4294967295, %s4360_s10   ;;  %s4360_s10 = sphi %s4429_s10, %s5205_s10   ;;  %s4356_s9 = sphi %s4427_s9, %s5207_s9   ;;  %s4352_s30 = sphi %s4425_s30, %s5209_s30   ;;  %s4348_s29 = sphi %s4423_s29, %s5208_s29  }
  0x11   : > { %5165 = sst [smem:[#allocation22_spill]] %s4356_s9  ;;  %s3109_s11 = sadd.s32 4294967294, %s4360_s10  }
  0x12   : > { %s4448_s12 = sadd.s32 1, %s4360_s10   ;;  %s81_s13 = sadd.s32 1, %s4356_s9 }
  0x13   : > { %5166 = sst [smem:[#allocation23_spill]] %s4448_s12  ;;  %s78_s14 = ssub.s32 %s4360_s10, %s4448_s12 }
  0x14   : > { %p88_p0 = scmp.ne.s32.totalorder %s4356_s9, %s4352_s30  ;;  %p79_p1 = scmp.eq.s32.totalorder %s78_s14, 0 }
  0x15   : > { %p89_p2 = scmp.eq.s32.totalorder %s4360_s10, 0  ;;  %p94_p3 = scmp.ne.s32.totalorder %s4352_s30, %s4348_s29 }
  0x16   : > { %p5139_p4 = scmp.eq.s32.totalorder %s4444_s0, 0  ;;  %p238_p7 = scmp.eq.s32.totalorder %s4444_s0, 1 }
  0x17   : > { %s4460_s15 = scalar_select %p79_p1, %s4356_s9, %s81_s13  }
  0x18   : > { %p4462_p5 = por %p89_p2, %p88_p0  ;;  %p4468_p6 = por %p5139_p4, %p94_p3 }
  0x19   : > { %5167 = sst [smem:[#allocation24_spill]] %s4460_s15  ;;  %p244_p8 = scmp.eq.s32.totalorder %s3109_s11, 1 }
  0x1a   : > { %s5168_s16 = scalar_select %p4462_p5, 1, 0 }
  0x1b   : > { %s5169_s17 = scalar_select %p4468_p6, 1, 0 }
  0x1c   : > { %p3110_p9 = scmp.ge.s32.totalorder %s4360_s10, 1  ;;  %p251_p10 = scmp.lt.s32.totalorder %s4360_s10, 3 }
  0x1d   : > { %p4475_p11 = por %p238_p7, %p88_p0  ;;  %p4479_p12 = por %p244_p8, %p94_p3 }
  0x1e   : > { %p4483_p13 = pnand %p3110_p9, %p251_p10  ;;  %s4362_s21 = smov [#allocation8]  }
  0x1f   : > { %s5170_s18 = scalar_select %p4475_p11, 1, 0 }
  0x20   : > { %s5172_s19 = scalar_select %p4479_p12, 1, 0 }
  0x21   : > { %5171 = sst [smem:[#allocation25_spill]] %s5170_s18  ;;  %p3520_p1 = pneg %p4483_p13 }
  0x22   : > { %5173 = sst [smem:[#allocation26_spill]] %s5172_s19  ;;  %s277_s22 = sshll.u32 %s4362_s21, 4  ;;  %s278_s22 = int_to_ptr.vmem [resolvable:$true] %s277_s22 }
  0x23   : > { %s5174_s20 = scalar_select %p4483_p13, 1, 0 }
  0x24   : > { %p4491_p2 = pnand %p3520_p1, %p5139_p4  ;;  %s4499_s25 = sand.u32 1, %s4356_s9  }
  0x25   : > { %s5176_s3 = sld [smem:[#allocation27_spill]] }
  0x26   : > { %s5175_s23 = scalar_select %p4491_p2, 1, 0 }
  0x27   : > { %p5145_p8 = pneg %p4491_p2 }
  0x2b   : > { %s4102_s28 = scalar_lea.hbm %s5176_s3, 256 }
  0x2c   : > { %p4103_p7 = scmp.ne.s32.totalorder %s5176_s3, %s4102_s28  ;;  %p4109_p1 = scmp.lt.u32.totalorder %s4102_s28, %s5176_s3 }
  0x2e   : > { %p4105_p9 = pnand %p5145_p8, %p4103_p7 }
  0x30   : > { %p4106_p10 = pneg %p4105_p9 }
  0x32   : > { %p4111_p0 = pnand %p4109_p1, %p4106_p10 }
  0x34   : > { %4114 = shalt.err (!%p4111_p0)
}
  0x35   : > { %s4115_s24 = scalar_lea.vmem %s278_s22, 256  ;;  %p4123_p11 = scmp.lt.s32.totalorder %s278_s22, %s278_s22 }
  0x36   : > { %p4116_p4 = scmp.ne.s32.totalorder %s278_s22, %s4115_s24  ;;  %p4124_p6 = scmp.lt.s32.totalorder %s4115_s24, %s4115_s24 }
  0x38   : > { %p4118_p3 = pnand %p4116_p4, %p5145_p8  ;;  %p4125_p13 = por %p4124_p6, %p4123_p11 }
  0x3a   : > { %p4119_p12 = pneg %p4118_p3 }
  0x3c   : > { %p4126_p5 = pnand %p4125_p13, %p4119_p12 }
  0x3e   : > { %4129 = shalt.err (!%p4126_p5)
}
  0x3f   : > { %s4363_s26 = smov 128   ;;  %s4364_s27 = smov 8  }
  0x40   : > { %3526 = dma.hbm_to_vmem [thread:$0]  (!%p4491_p2), %s5176_s3, 256, %s278_s22, [#allocation7], %s4363_s26, %s4363_s26, %s4364_s27  }
  0x41   : > { %p5177_p4 = scmp.ne.s32.totalorder %s5168_s16, 0  ;;  %p5178_p0 = scmp.lt.s32.totalorder %s4360_s10, 2 }
  0x42   : > { %s3117_s13 = sshll.u32 %s4499_s25, 11  ;;  %s5144_s14 = sshll.u32 %s4360_s10, 8 }
  0x43   : > { %p4527_p3 = pnand %p5178_p0, %p5177_p4  ;;  %s5180_s5 = sld [smem:[#allocation29_spill]] }
  0x44   : > { %s317_s22 = scalar_lea.vmem [#allocation9], %s3117_s13  ;;  %s5181_s26 = sand.u32 1, %s4360_s10  }
  0x45   : > { %s5179_s24 = scalar_select %p4527_p3, 1, 0 }
  0x46   : > { %s324_s16 = sshll.u32 %s317_s22, 4  ;;  %s4544_s27 = scalar_lea.sflag [#allocation10], %s5181_s26  ;;  %s4540_s16 = int_to_ptr.vmem [resolvable:$true] %s324_s16 }
  0x47   : > { %p4550_p6 = pneg %p4527_p3 }
  0x49   : > { %s4538_s9 = scalar_lea.hbm %s5180_s5, %s5144_s14  ;;  %s4135_s13 = scalar_lea.hbm %s5180_s5, 65536 }
  0x4a   : > { %s4130_s28 = scalar_lea.hbm %s4538_s9, 32768  ;;  %p4136_p13 = scmp.lt.u32.totalorder %s4538_s9, %s5180_s5 }
  0x4b   : > { %p4131_p5 = scmp.ne.s32.totalorder %s4538_s9, %s4130_s28  ;;  %p4137_p7 = scmp.lt.u32.totalorder %s4135_s13, %s4130_s28 }
  0x4c   : > { %s5182_s11 = scalar_select %p4550_p6, 1, 0 }
  0x4d   : > { %p4133_p11 = pnand %p4550_p6, %p4131_p5  ;;  %p4138_p9 = por %p4137_p7, %p4136_p13 }
  0x4e   : > { %p4139_p10 = scmp.lt.u32.totalorder %s4130_s28, %s4538_s9 }
  0x4f   : > { %p4134_p12 = pneg %p4133_p11 }
  0x50   : > { %p4140_p1 = por %p4139_p10, %p4138_p9 }
  0x52   : > { %p4141_p4 = pnand %p4140_p1, %p4134_p12 }
  0x54   : > { %4144 = shalt.err (!%p4141_p4)
}
  0x55   : > { %s4145_s26 = scalar_lea.vmem %s4540_s16, 32768  ;;  %s4365_s15 = smov [#allocation9]  }
  0x56   : > { %p4146_p0 = scmp.ne.s32.totalorder %s4540_s16, %s4145_s26  ;;  %s4150_s21 = sshll.u32 %s4365_s15, 4  ;;  %s4151_s21 = int_to_ptr.vmem [resolvable:$false] %s4150_s21 }
  0x57   : > { %s4152_s14 = scalar_lea.vmem %s4151_s21, 65536  ;;  %p4153_p8 = scmp.lt.s32.totalorder %s4540_s16, %s4151_s21 }
  0x58   : > { %p4148_p5 = pnand %p4146_p0, %p4550_p6  ;;  %p4154_p2 = scmp.lt.s32.totalorder %s4152_s14, %s4145_s26 }
  0x5a   : > { %p4149_p11 = pneg %p4148_p5  ;;  %p4155_p13 = por %p4154_p2, %p4153_p8 }
  0x5c   : > { %p4156_p7 = pnand %p4155_p13, %p4149_p11 }
  0x5e   : > { %4159 = shalt.err (!%p4156_p7)
}
  0x5f   : > { %s4366_s28 = smov 512   ;;  %s4367_s13 = smov 256  }
  0x60   : > { %s4368_s22 = smov 16   ;;  %s5183_s15 = sshll.u32 %s4360_s10, 8 }
  0x61   : > { %3533 = dma.hbm_to_vmem [thread:$0]  (!%p4527_p3), %s4538_s9, 32768, %s4540_s16, %s4544_s27, %s4366_s28, %s4367_s13, %s4368_s22  }
  0x62   : > { %s4582_s14 = scalar_lea.hbm %s5136_s6, %s5183_s15  ;;  %s4369_s3 = smov [#allocation3]  }
  0x63   : > { %s267_s5 = sshll.u32 %s4369_s3, 4  ;;  %s3114_s12 = sshll.u32 %s4499_s25, 5  ;;  %s268_s5 = int_to_ptr.vmem [resolvable:$true] %s267_s5 }
  0x64   : > { %s4160_s8 = scalar_lea.hbm %s5131_s1, 512  ;;  %p5184_p8 = scmp.ne.s32.totalorder %s5175_s23, 0 }
  0x65   : > { %p4161_p2 = scmp.ne.s32.totalorder %s5131_s1, %s4160_s8  ;;  %p4167_p1 = scmp.lt.u32.totalorder %s4160_s8, %s5131_s1 }
  0x66   : > { %p5185_p12 = pneg %p5184_p8 }
  0x68   : > { %p4163_p9 = pnand %p4161_p2, %p5185_p12 }
  0x6a   : > { %p4164_p10 = pneg %p4163_p9 }
  0x6c   : > { %p4169_p4 = pnand %p4167_p1, %p4164_p10 }
  0x6e   : > { %4172 = shalt.err (!%p4169_p4)
}
  0x6f   : > { %s4173_s3 = scalar_lea.vmem %s268_s5, 512  ;;  %p5186_p5 = pmov %p5185_p12 }
  0x70   : > { %p4174_p0 = scmp.ne.s32.totalorder %s268_s5, %s4173_s3  ;;  %p4181_p7 = scmp.lt.s32.totalorder %s268_s5, %s268_s5 }
  0x71   : > { %p4182_p3 = scmp.lt.s32.totalorder %s4173_s3, %s4173_s3 }
  0x72   : > { %p4176_p11 = pnand %p4174_p0, %p5186_p5 }
  0x73   : > { %p4183_p6 = por %p4182_p3, %p4181_p7 }
  0x74   : > { %p4177_p13 = pneg %p4176_p11 }
  0x76   : > { %p4184_p2 = pnand %p4183_p6, %p4177_p13 }
  0x78   : > { %4187 = shalt.err (!%p4184_p2)
}
  0x79   : > { %3523 = dma.hbm_to_vmem [thread:$0]  (!%p5184_p8), %s5131_s1, 512, %s268_s5, [#allocation4]  }
  0x7a   : > { %s3469_s8 = sshll.u32 %s4360_s10, 9  ;;  %s298_s26 = scalar_lea.vmem [#allocation6], %s3114_s12 }
  0x7b   : > { %s4609_s15 = scalar_lea.hbm %s5132_s2, %s3469_s8  ;;  %s306_s23 = sshll.u32 %s298_s26, 4  ;;  %s4611_s23 = int_to_ptr.vmem [resolvable:$true] %s306_s23 }
  0x7c   : > { %s3120_s21 = sshll.u32 %s4499_s25, 9  ;;  %s5187_s9 = sand.u32 1, %s4360_s10  }
  0x7d   : > { %s295_s16 = scalar_lea.sflag [#allocation7], %s5187_s9  ;;  %s4188_s3 = scalar_lea.hbm %s4609_s15, 512 }
  0x7e   : > { %p4189_p3 = scmp.ne.s32.totalorder %s4609_s15, %s4188_s3  ;;  %p5188_p6 = scmp.ne.s32.totalorder %s5182_s11, 0 }
  0x7f   : > { %s4193_s29 = scalar_lea.hbm %s5132_s2, 1024  ;;  %p4194_p9 = scmp.lt.u32.totalorder %s4609_s15, %s5132_s2 }
  0x80   : > { %p4191_p8 = pnand %p4189_p3, %p5188_p6  ;;  %p4195_p10 = scmp.lt.u32.totalorder %s4193_s29, %s4188_s3 }
  0x81   : > { %p4197_p4 = scmp.lt.u32.totalorder %s4188_s3, %s4609_s15 }
  0x82   : > { %p4192_p12 = pneg %p4191_p8  ;;  %p4196_p1 = por %p4195_p10, %p4194_p9 }
  0x84   : > { %p4198_p0 = por %p4197_p4, %p4196_p1 }
  0x86   : > { %p4199_p5 = pnand %p4198_p0, %p4192_p12 }
  0x88   : > { %4202 = shalt.err (!%p4199_p5)
}
  0x89   : > { %s4203_s12 = scalar_lea.vmem %s4611_s23, 512  ;;  %s4370_s19 = smov [#allocation6]  }
  0x8a   : > { %p4204_p11 = scmp.ne.s32.totalorder %s4611_s23, %s4203_s12  ;;  %s4208_s26 = sshll.u32 %s4370_s19, 4  ;;  %s4209_s26 = int_to_ptr.vmem [resolvable:$false] %s4208_s26 }
  0x8b   : > { %s4210_s9 = scalar_lea.vmem %s4209_s26, 1024  ;;  %p4211_p2 = scmp.lt.s32.totalorder %s4611_s23, %s4209_s26 }
  0x8c   : > { %p4206_p13 = pnand %p4204_p11, %p5188_p6  ;;  %p4212_p3 = scmp.lt.s32.totalorder %s4210_s9, %s4203_s12 }
  0x8e   : > { %p4207_p7 = pneg %p4206_p13  ;;  %p4213_p8 = por %p4212_p3, %p4211_p2 }
  0x90   : > { %p4214_p9 = pnand %p4213_p8, %p4207_p7 }
  0x92   : > { %4217 = shalt.err (!%p4214_p9)
}
  0x93   : > { %p5189_p12 = scmp.ne.s32.totalorder %s5179_s24, 0  ;;  %s338_s3 = scalar_lea.vmem [#allocation11], %s3120_s21 }
  0x94   : > { %s345_s5 = sshll.u32 %s338_s3, 4  ;;  %s3123_s4 = sshll.u32 %s4499_s25, 2  ;;  %s4640_s5 = int_to_ptr.vmem [resolvable:$true] %s345_s5 }
  0x95   : > { %3530 = dma.hbm_to_vmem [thread:$0]  (!%p5189_p12), %s4609_s15, 512, %s4611_s23, %s295_s16  }
  0x96   : > { %s4218_s29 = scalar_lea.hbm %s4582_s14, 8192  ;;  %s4223_s12 = scalar_lea.hbm %s5136_s6, 16384 }
  0x97   : > { %p4219_p10 = scmp.ne.s32.totalorder %s4582_s14, %s4218_s29  ;;  %p4224_p0 = scmp.lt.u32.totalorder %s4582_s14, %s5136_s6 }
  0x98   : > { %p4225_p5 = scmp.lt.u32.totalorder %s4223_s12, %s4218_s29  ;;  %p4227_p13 = scmp.lt.u32.totalorder %s4218_s29, %s4582_s14 }
  0x99   : > { %p4221_p1 = pnand %p4219_p10, %p5188_p6 }
  0x9a   : > { %p4226_p11 = por %p4225_p5, %p4224_p0 }
  0x9b   : > { %p4222_p4 = pneg %p4221_p1 }
  0x9c   : > { %p4228_p7 = por %p4227_p13, %p4226_p11 }
  0x9e   : > { %p4229_p2 = pnand %p4228_p7, %p4222_p4 }
  0xa0   : > { %4232 = shalt.err (!%p4229_p2)
}
  0xa1   : > { %s4233_s15 = scalar_lea.vmem %s4640_s5, 8192  ;;  %s4371_s23 = smov [#allocation11]  }
  0xa2   : > { %p4234_p3 = scmp.ne.s32.totalorder %s4640_s5, %s4233_s15  ;;  %s4238_s21 = sshll.u32 %s4371_s23, 4  ;;  %s4239_s21 = int_to_ptr.vmem [resolvable:$false] %s4238_s21 }
  0xa3   : > { %s4240_s16 = scalar_lea.vmem %s4239_s21, 16384  ;;  %p4241_p10 = scmp.lt.s32.totalorder %s4640_s5, %s4239_s21 }
  0xa4   : > { %p4236_p8 = pnand %p4234_p3, %p5188_p6  ;;  %p4242_p1 = scmp.lt.s32.totalorder %s4240_s16, %s4233_s15 }
  0xa6   : > { %p4237_p9 = pneg %p4236_p8  ;;  %p4243_p0 = por %p4242_p1, %p4241_p10 }
  0xa8   : > { %p4244_p5 = pnand %p4243_p0, %p4237_p9 }
  0xaa   : > { %4247 = shalt.err (!%p4244_p5)
}
  0xab   : > { %3536 = dma.hbm_to_vmem [thread:$0]  (!%p5189_p12), %s4582_s14, 8192, %s4640_s5, %s4544_s27, %s4366_s28, %s4367_s13, %s4368_s22  }
  0xac   : > { %s3472_s9 = sshll.u32 %s4360_s10, 6  ;;  %s359_s3 = scalar_lea.vmem [#allocation12], %s3123_s4 }
  0xad   : > { %s367_s29 = sshll.u32 %s359_s3, 4  ;;  %s4673_s12 = scalar_lea.hbm %s5137_s7, %s3472_s9  ;;  %s368_s29 = int_to_ptr.vmem [resolvable:$true] %s367_s29 }
  0xae   : > { %s356_s19 = scalar_lea.sflag [#allocation13], %s4499_s25  ;;  %s4248_s26 = scalar_lea.hbm %s4673_s12, 64 }
  0xaf   : > { %p4249_p4 = scmp.ne.s32.totalorder %s4673_s12, %s4248_s26  ;;  %s4253_s13 = scalar_lea.hbm %s5137_s7, 128 }
  0xb0   : > { %p4254_p7 = scmp.lt.u32.totalorder %s4673_s12, %s5137_s7  ;;  %p4255_p2 = scmp.lt.u32.totalorder %s4253_s13, %s4248_s26 }
  0xb1   : > { %p4251_p11 = pnand %p4249_p4, %p5188_p6  ;;  %p4257_p8 = scmp.lt.u32.totalorder %s4248_s26, %s4673_s12 }
  0xb2   : > { %p4256_p3 = por %p4255_p2, %p4254_p7 }
  0xb3   : > { %p4252_p13 = pneg %p4251_p11 }
  0xb4   : > { %p4258_p9 = por %p4257_p8, %p4256_p3 }
  0xb6   : > { %p4259_p10 = pnand %p4258_p9, %p4252_p13 }
  0xb8   : > { %4262 = shalt.err (!%p4259_p10)
}
  0xb9   : > { %s4263_s25 = scalar_lea.vmem %s368_s29, 64  ;;  %s4372_s5 = smov [#allocation12]  }
  0xba   : > { %p4264_p1 = scmp.ne.s32.totalorder %s368_s29, %s4263_s25  ;;  %s4268_s4 = sshll.u32 %s4372_s5, 4  ;;  %s4269_s4 = int_to_ptr.vmem [resolvable:$false] %s4268_s4 }
  0xbb   : > { %s4270_s15 = scalar_lea.vmem %s4269_s4, 128  ;;  %p4271_p4 = scmp.lt.s32.totalorder %s368_s29, %s4269_s4 }
  0xbc   : > { %p4266_p0 = pnand %p4264_p1, %p5188_p6  ;;  %p4272_p11 = scmp.lt.s32.totalorder %s4270_s15, %s4263_s25 }
  0xbe   : > { %p4267_p5 = pneg %p4266_p0  ;;  %p4273_p12 = por %p4272_p11, %p4271_p4 }
  0xc0   : > { %p4274_p2 = pnand %p4273_p12, %p4267_p5 }
  0xc2   : > { %4277 = shalt.err (!%p4274_p2)
}
  0xc3   : > { %p5190_p7 = scmp.ne.s32.totalorder %s5179_s24, 0  ;;  %p5191_p13 = scmp.ne.s32.totalorder %s5174_s20, 0 }
  0xc4   : > { %p5192_p3 = scmp.eq.s32.totalorder (!%p5191_p13), %s4444_s0, 0 }
  0xc5   : > { %3539 = dma.hbm_to_vmem [thread:$0]  (!%p5190_p7), %s4673_s12, 64, %s368_s29, %s356_s19  }
  0xc6   : > { %376 = sbr.rel (%p5191_p13) target bundleno = 798 (0x31e), region = 52 }
  0xcd   : > { %4323 = dma.done.wait (%p5192_p3), [#allocation4], 512   ;;  %p5193_p6 = pmov %p5192_p3 }
  0xce   : > { %s382_s11 = sand.u32 1, %s4444_s0   ;;  %s4701_s23 = sand.u32 1, %s4352_s30  }
  0xcf   : > { %4325 = vsyncadd (%p5193_p6), [#allocation4], 4294966784  ;;  %s3128_s24 = sshll.u32 %s4701_s23, 5  ;;  %s383_s21 = scalar_lea.sflag [#allocation7], %s382_s11 }
  0xd0   : > { %s4706_s16 = scalar_lea.vmem [#allocation6], %s3128_s24  ;;  %p5194_p12 = scmp.ne.s32.totalorder %s5169_s17, 0 }
  0xd2   : > { %4327 = dma.done.wait (%p5194_p12), %s383_s21, 512  }
  0xd3   : > { %4329 = vsyncadd (%p5194_p12), %s383_s21, 4294966784  ;;  %p5195_p8 = pmov %p5192_p3 }
  0xd4   : > { %p5196_p9 = pmov %p5192_p3 }
  0xd5   : > { %4331 = dma.done.wait (%p5195_p8), [#allocation7], 256  }
  0xd6   : > { %4333 = vsyncadd (%p5196_p9), [#allocation7], 4294967040  ;;  %s3130_s20 = sshll.u32 %s4701_s23, 11  ;;  %s396_s9 = scalar_lea.sflag [#allocation10], %s382_s11 }
  0xd7   : > { %s4717_s3 = scalar_lea.vmem [#allocation9], %s3130_s20 }
  0xd8   : > { %4335 = dma.done.wait (%p5194_p12), %s396_s9, 40960  }
  0xd9   : > { %4337 = vsyncadd (%p5194_p12), %s396_s9, 4294926336  ;;  %s3131_s29 = sshll.u32 %s4701_s23, 9  ;;  %s3132_s8 = sshll.u32 %s4701_s23, 2 }
  0xda   : > { %s4725_s18 = scalar_lea.vmem [#allocation11], %s3131_s29  ;;  %s414_s12 = scalar_lea.sflag [#allocation13], %s4701_s23 }
  0xdb   : > { %s4728_s19 = scalar_lea.vmem [#allocation12], %s3132_s8 }
  0xdc   : > { %4339 = dma.done.wait (%p5194_p12), %s414_s12, 64  }
  0xdd   : > { %4341 = vsyncadd (%p5194_p12), %s414_s12, 4294967232  ;;  %v3591_v0 = vld [vmem:[%s4717_s3 + $0x4] ss:$16 sps:$4 sm:$0xff]   ;;  %v3593_v1 = vld [vmem:[%s4717_s3 + $0xc] ss:$16 sps:$4 sm:$0xff]   ;;  %s5197_s27 = sld [smem:[#allocation28_spill]] }
  0xde   : > { %2060 = vmatprep.subr.bf16.mxu0 %v3591_v0  ;;  %v3595_v2 = vld [vmem:[%s4717_s3] ss:$16 sps:$4 sm:$0xff]   ;;  %v3596_v3 = vld [vmem:[%s4717_s3 + $0x8] ss:$16 sps:$4 sm:$0xff]   ;;  %2224 = vmatprep.subr.bf16.mxu1 %v3593_v1  ;;  %v3597_v4 = vld [vmem:[%s4717_s3 + $0x24] ss:$16 sps:$4 sm:$0xff]  }
  0xdf   : > { %2061 = vmatpush1.bf16.msra.mxu0 %v3595_v2  ;;  %2225 = vmatpush1.bf16.msra.mxu1 %v3596_v3  ;;  %v3599_v5 = vld [vmem:[%s4717_s3 + $0x2c] ss:$16 sps:$4 sm:$0xff]   ;;  %v3601_v6 = vld [vmem:[%s4717_s3 + $0x20] ss:$16 sps:$4 sm:$0xff]   ;;  %v3602_v7 = vld [vmem:[%s4717_s3 + $0x28] ss:$16 sps:$4 sm:$0xff]  }
  0xe0   : > { %2062 = vmatprep.subr.bf16.mxu0 %v3597_v4  ;;  %2226 = vmatprep.subr.bf16.mxu1 %v3599_v5  ;;  %v3603_v8 = vld [vmem:[%s4717_s3 + $0x44] ss:$16 sps:$4 sm:$0xff]   ;;  %v3605_v9 = vld [vmem:[%s4717_s3 + $0x4c] ss:$16 sps:$4 sm:$0xff]   ;;  %v3607_v10 = vld [vmem:[%s4717_s3 + $0x40] ss:$16 sps:$4 sm:$0xff]  }
  0xe1   : > { %v3608_v11 = vld [vmem:[%s4717_s3 + $0x48] ss:$16 sps:$4 sm:$0xff]   ;;  %v3609_v12 = vld [vmem:[%s4717_s3 + $0x64] ss:$16 sps:$4 sm:$0xff]   ;;  %v3611_v13 = vld [vmem:[%s4717_s3 + $0x6c] ss:$16 sps:$4 sm:$0xff]  }
  0xe2   : > { %v3613_v14 = vld [vmem:[%s4717_s3 + $0x60] ss:$16 sps:$4 sm:$0xff]   ;;  %v3614_v15 = vld [vmem:[%s4717_s3 + $0x68] ss:$16 sps:$4 sm:$0xff]   ;;  %v3615_v16 = vld [vmem:[%s4717_s3 + $0x84] ss:$16 sps:$4 sm:$0xff]  }
  0xe3   : > { %2063 = vmatpush1.bf16.msra.mxu0 %v3601_v6  ;;  %2227 = vmatpush1.bf16.msra.mxu1 %v3602_v7  ;;  %v3617_v17 = vld [vmem:[%s4717_s3 + $0x8c] ss:$16 sps:$4 sm:$0xff]   ;;  %v3619_v18 = vld [vmem:[%s4717_s3 + $0x80] ss:$16 sps:$4 sm:$0xff]   ;;  %v3620_v19 = vld [vmem:[%s4717_s3 + $0x88] ss:$16 sps:$4 sm:$0xff]  }
  0xe4   : > { %2064 = vmatprep.subr.bf16.mxu0 %v3603_v8  ;;  %2228 = vmatprep.subr.bf16.mxu1 %v3605_v9  ;;  %v3621_v20 = vld [vmem:[%s4717_s3 + $0xa4] ss:$16 sps:$4 sm:$0xff]   ;;  %v3623_v21 = vld [vmem:[%s4717_s3 + $0xac] ss:$16 sps:$4 sm:$0xff]   ;;  %v3625_v22 = vld [vmem:[%s4717_s3 + $0xa0] ss:$16 sps:$4 sm:$0xff]  }
  0xe5   : > { %v3626_v23 = vld [vmem:[%s4717_s3 + $0xa8] ss:$16 sps:$4 sm:$0xff]   ;;  %v3627_v24 = vld [vmem:[%s4717_s3 + $0xc4] ss:$16 sps:$4 sm:$0xff]   ;;  %v3629_v25 = vld [vmem:[%s4717_s3 + $0xcc] ss:$16 sps:$4 sm:$0xff]  }
  0xe6   : > { %v3631_v26 = vld [vmem:[%s4717_s3 + $0xc0] ss:$16 sps:$4 sm:$0xff]   ;;  %v3632_v27 = vld [vmem:[%s4717_s3 + $0xc8] ss:$16 sps:$4 sm:$0xff]   ;;  %v3633_v28 = vld [vmem:[%s4717_s3 + $0xe4] ss:$16 sps:$4 sm:$0xff]  }
  0xe7   : > { %2065 = vmatpush1.bf16.msra.mxu0 %v3607_v10  ;;  %2229 = vmatpush1.bf16.msra.mxu1 %v3608_v11  ;;  %v3635_v29 = vld [vmem:[%s4717_s3 + $0xec] ss:$16 sps:$4 sm:$0xff]   ;;  %v3637_v30 = vld [vmem:[%s4717_s3 + $0xe0] ss:$16 sps:$4 sm:$0xff]   ;;  %v3638_v31 = vld [vmem:[%s4717_s3 + $0xe8] ss:$16 sps:$4 sm:$0xff]  }
  0xe8   : > { %2066 = vmatprep.subr.bf16.mxu0 %v3609_v12  ;;  %2230 = vmatprep.subr.bf16.mxu1 %v3611_v13  ;;  %v3639_v32 = vld [vmem:[%s4717_s3 + $0x104] ss:$16 sps:$4 sm:$0xff]   ;;  %v3641_v33 = vld [vmem:[%s4717_s3 + $0x10c] ss:$16 sps:$4 sm:$0xff]   ;;  %v3643_v34 = vld [vmem:[%s4717_s3 + $0x100] ss:$16 sps:$4 sm:$0xff]  }
  0xe9   : > { %v3644_v35 = vld [vmem:[%s4717_s3 + $0x108] ss:$16 sps:$4 sm:$0xff]   ;;  %v3645_v36 = vld [vmem:[%s4717_s3 + $0x124] ss:$16 sps:$4 sm:$0xff]   ;;  %v3647_v37 = vld [vmem:[%s4717_s3 + $0x12c] ss:$16 sps:$4 sm:$0xff]  }
  0xea   : > { %v3649_v38 = vld [vmem:[%s4717_s3 + $0x120] ss:$16 sps:$4 sm:$0xff]   ;;  %v3650_v39 = vld [vmem:[%s4717_s3 + $0x128] ss:$16 sps:$4 sm:$0xff]   ;;  %v3651_v40 = vld [vmem:[%s4717_s3 + $0x144] ss:$16 sps:$4 sm:$0xff]  }
  0xeb   : > { %2067 = vmatpush1.bf16.msra.mxu0 %v3613_v14  ;;  %2231 = vmatpush1.bf16.msra.mxu1 %v3614_v15  ;;  %v3653_v41 = vld [vmem:[%s4717_s3 + $0x14c] ss:$16 sps:$4 sm:$0xff]   ;;  %v3655_v42 = vld [vmem:[%s4717_s3 + $0x140] ss:$16 sps:$4 sm:$0xff]   ;;  %v3656_v43 = vld [vmem:[%s4717_s3 + $0x148] ss:$16 sps:$4 sm:$0xff]  }
  0xec   : > { %2068 = vmatprep.subr.bf16.mxu0 %v3615_v16  ;;  %2232 = vmatprep.subr.bf16.mxu1 %v3617_v17  ;;  %v3657_v44 = vld [vmem:[%s4717_s3 + $0x164] ss:$16 sps:$4 sm:$0xff]   ;;  %v3659_v45 = vld [vmem:[%s4717_s3 + $0x16c] ss:$16 sps:$4 sm:$0xff]   ;;  %v3661_v47 = vld [vmem:[%s4717_s3 + $0x160] ss:$16 sps:$4 sm:$0xff]  }
  0xed   : > { %v470_v46 = vld [vmem:[#allocation3] sm:$0xff]  ;;  %v3662_v49 = vld [vmem:[%s4717_s3 + $0x168] ss:$16 sps:$4 sm:$0xff]   ;;  %v3665_v51 = vld [vmem:[%s4717_s3 + $0x18c] ss:$16 sps:$4 sm:$0xff]   ;;  %s2885_s28 = sld [smem:[#allocation2]] }
  0xee   : > { %v3135_v48 = vcombine.high %v470_v46, %v470_v46  ;;  %v3663_v50 = vld [vmem:[%s4717_s3 + $0x184] ss:$16 sps:$4 sm:$0xff]   ;;  %v3667_v52 = vld [vmem:[%s4717_s3 + $0x180] ss:$16 sps:$4 sm:$0xff]   ;;  %v3668_v53 = vld [vmem:[%s4717_s3 + $0x188] ss:$16 sps:$4 sm:$0xff]   ;;  %v3134_v4 = vcombine.low %v470_v46, %v470_v46 }
  0xef   : > { %2069 = vmatpush1.bf16.msra.mxu0 %v3619_v18  ;;  %2233 = vmatpush1.bf16.msra.mxu1 %v3620_v19  ;;  %v3669_v54 = vld [vmem:[%s4717_s3 + $0x1a4] ss:$16 sps:$4 sm:$0xff]   ;;  %v3671_v55 = vld [vmem:[%s4717_s3 + $0x1ac] ss:$16 sps:$4 sm:$0xff]   ;;  %v3673_v56 = vld [vmem:[%s4717_s3 + $0x1a0] ss:$16 sps:$4 sm:$0xff]  }
  0xf0   : > { %2070 = vmatprep.subr.bf16.mxu0 %v3621_v20  ;;  %2234 = vmatprep.subr.bf16.mxu1 %v3623_v21  ;;  %v3674_v57 = vld [vmem:[%s4717_s3 + $0x1a8] ss:$16 sps:$4 sm:$0xff]   ;;  %v3675_v58 = vld [vmem:[%s4717_s3 + $0x1c4] ss:$16 sps:$4 sm:$0xff]   ;;  %v3677_v59 = vld [vmem:[%s4717_s3 + $0x1cc] ss:$16 sps:$4 sm:$0xff]  }
  0xf1   : > { %2092 = vmatprep.mubr.bf16.mxu0 %v3135_v48  ;;  %2256 = vmatprep.mubr.bf16.mxu1 %v3135_v48  ;;  %v3679_v60 = vld [vmem:[%s4717_s3 + $0x1c0] ss:$16 sps:$4 sm:$0xff]   ;;  %v3680_v61 = vld [vmem:[%s4717_s3 + $0x1c8] ss:$16 sps:$4 sm:$0xff]   ;;  %v3681_v62 = vld [vmem:[%s4717_s3 + $0x1e4] ss:$16 sps:$4 sm:$0xff]  }
  0xf2   : > { %v3683_v63 = vld [vmem:[%s4717_s3 + $0x1ec] ss:$16 sps:$4 sm:$0xff]   ;;  %v3685_v0 = vld [vmem:[%s4717_s3 + $0x1e0] ss:$16 sps:$4 sm:$0xff]   ;;  %v3686_v1 = vld [vmem:[%s4717_s3 + $0x1e8] ss:$16 sps:$4 sm:$0xff]  }
  0xf3   : > { %2071 = vmatpush1.bf16.msra.mxu0 %v3625_v22  ;;  %2235 = vmatpush1.bf16.msra.mxu1 %v3626_v23  ;;  %v3691_v2 = vld [vmem:[%s4717_s3 + $0x204] ss:$16 sps:$4 sm:$0xff]   ;;  %v3694_v3 = vld [vmem:[%s4717_s3 + $0x20c] ss:$16 sps:$4 sm:$0xff]   ;;  %v3689_v5 = vld [vmem:[%s4717_s3 + $0x200] ss:$16 sps:$4 sm:$0xff]  }
  0xf4   : > { %2072 = vmatprep.subr.bf16.mxu0 %v3627_v24  ;;  %2236 = vmatprep.subr.bf16.mxu1 %v3629_v25  ;;  %v3692_v6 = vld [vmem:[%s4717_s3 + $0x208] ss:$16 sps:$4 sm:$0xff]   ;;  %v3697_v7 = vld [vmem:[%s4717_s3 + $0x224] ss:$16 sps:$4 sm:$0xff]   ;;  %v3700_v8 = vld [vmem:[%s4717_s3 + $0x22c] ss:$16 sps:$4 sm:$0xff]  }
  0xf5   : > { %v3695_v9 = vld [vmem:[%s4717_s3 + $0x220] ss:$16 sps:$4 sm:$0xff]   ;;  %v3698_v10 = vld [vmem:[%s4717_s3 + $0x228] ss:$16 sps:$4 sm:$0xff]   ;;  %v3703_v11 = vld [vmem:[%s4717_s3 + $0x244] ss:$16 sps:$4 sm:$0xff]  }
  0xf6   : > { %v3706_v12 = vld [vmem:[%s4717_s3 + $0x24c] ss:$16 sps:$4 sm:$0xff]   ;;  %v3701_v13 = vld [vmem:[%s4717_s3 + $0x240] ss:$16 sps:$4 sm:$0xff]   ;;  %v3704_v14 = vld [vmem:[%s4717_s3 + $0x248] ss:$16 sps:$4 sm:$0xff]  }
  0xf7   : > { %2073 = vmatpush1.bf16.msra.mxu0 %v3631_v26  ;;  %2237 = vmatpush1.bf16.msra.mxu1 %v3632_v27  ;;  %v3709_v15 = vld [vmem:[%s4717_s3 + $0x264] ss:$16 sps:$4 sm:$0xff]   ;;  %v3712_v16 = vld [vmem:[%s4717_s3 + $0x26c] ss:$16 sps:$4 sm:$0xff]   ;;  %v3707_v17 = vld [vmem:[%s4717_s3 + $0x260] ss:$16 sps:$4 sm:$0xff]  }
  0xf8   : > { %2074 = vmatprep.subr.bf16.mxu0 %v3633_v28  ;;  %2238 = vmatprep.subr.bf16.mxu1 %v3635_v29  ;;  %v3710_v18 = vld [vmem:[%s4717_s3 + $0x268] ss:$16 sps:$4 sm:$0xff]   ;;  %v3715_v19 = vld [vmem:[%s4717_s3 + $0x284] ss:$16 sps:$4 sm:$0xff]   ;;  %v3718_v20 = vld [vmem:[%s4717_s3 + $0x28c] ss:$16 sps:$4 sm:$0xff]  }
  0xf9   : > { %v3713_v21 = vld [vmem:[%s4717_s3 + $0x280] ss:$16 sps:$4 sm:$0xff]   ;;  %v3716_v22 = vld [vmem:[%s4717_s3 + $0x288] ss:$16 sps:$4 sm:$0xff]   ;;  %v3721_v23 = vld [vmem:[%s4717_s3 + $0x2a4] ss:$16 sps:$4 sm:$0xff]  }
  0xfa   : > { %v3724_v24 = vld [vmem:[%s4717_s3 + $0x2ac] ss:$16 sps:$4 sm:$0xff]   ;;  %v3719_v25 = vld [vmem:[%s4717_s3 + $0x2a0] ss:$16 sps:$4 sm:$0xff]   ;;  %v3722_v26 = vld [vmem:[%s4717_s3 + $0x2a8] ss:$16 sps:$4 sm:$0xff]  }
  0xfb   : > { %2075 = vmatpush1.bf16.msra.mxu0 %v3637_v30  ;;  %2239 = vmatpush1.bf16.msra.mxu1 %v3638_v31  ;;  %v3727_v27 = vld [vmem:[%s4717_s3 + $0x2c4] ss:$16 sps:$4 sm:$0xff]   ;;  %v3730_v28 = vld [vmem:[%s4717_s3 + $0x2cc] ss:$16 sps:$4 sm:$0xff]   ;;  %v3725_v31 = vld [vmem:[%s4717_s3 + $0x2c0] ss:$16 sps:$4 sm:$0xff]  }
  0xfc   : > { %2076 = vmatprep.subr.bf16.mxu0 %v3639_v32  ;;  %2240 = vmatprep.subr.bf16.mxu1 %v3641_v33  ;;  %v4824_v29 = vld [vmem:[#allocation3 + $0x8] sm:$0xff]  ;;  %v3733_v33 = vld [vmem:[%s4717_s3 + $0x2e4] ss:$16 sps:$4 sm:$0xff]   ;;  %s3473_s13 = sshll.u32 %s4444_s0, 9  ;;  %s464_s22 = scalar_lea.vmem [#allocation14], %s3128_s24 }
  0xfd   : > { %v3137_v30 = vcombine.high %v4824_v29, %v4824_v29  ;;  %v3728_v32 = vld [vmem:[%s4717_s3 + $0x2c8] ss:$16 sps:$4 sm:$0xff]   ;;  %v3754_v46 = vld [vmem:[%s4717_s3 + $0x34c] ss:$16 sps:$4 sm:$0xff]   ;;  %s5198_s14 = sld [smem:[#allocation25_spill]]  ;;  %s2952_s25 = sshll.u32 %s464_s22, 4  ;;  %s5088_s25 = int_to_ptr.vmem [resolvable:$true] %s2952_s25 }
  0xfe   : > { %v3752_v48 = vld [vmem:[%s4717_s3 + $0x348] ss:$16 sps:$4 sm:$0xff]   ;;  %s5199_s15 = sld [smem:[#allocation30_spill]]  ;;  %s2938_s0 = scalar_lea.sflag [#allocation5], %s4701_s23 }
  0xff   : > { %2077 = vmatpush1.bf16.msra.mxu0 %v3643_v34  ;;  %2241 = vmatpush1.bf16.msra.mxu1 %v3644_v35  ;;  %v3736_v34 = vld [vmem:[%s4717_s3 + $0x2ec] ss:$16 sps:$4 sm:$0xff]   ;;  %v3731_v35 = vld [vmem:[%s4717_s3 + $0x2e0] ss:$16 sps:$4 sm:$0xff]   ;;  %s4278_s24 = scalar_lea.vmem %s5088_s25, 512  ;;  %s4374_s21 = smov [#allocation14]  }
 0x100   : > { %2078 = vmatprep.subr.bf16.mxu0 %v3645_v36  ;;  %2242 = vmatprep.subr.bf16.mxu1 %v3647_v37  ;;  %v3734_v36 = vld [vmem:[%s4717_s3 + $0x2e8] ss:$16 sps:$4 sm:$0xff]   ;;  %v3739_v37 = vld [vmem:[%s4717_s3 + $0x304] ss:$16 sps:$4 sm:$0xff]   ;;  %p4279_p10 = scmp.ne.s32.totalorder %s5088_s25, %s4278_s24 }
 0x103   : > { %2079 = vmatpush1.bf16.msra.mxu0 %v3649_v38  ;;  %2243 = vmatpush1.bf16.msra.mxu1 %v3650_v39  ;;  %v3742_v38 = vld [vmem:[%s4717_s3 + $0x30c] ss:$16 sps:$4 sm:$0xff]   ;;  %v3737_v39 = vld [vmem:[%s4717_s3 + $0x300] ss:$16 sps:$4 sm:$0xff]   ;;  %p5200_p1 = scmp.ne.s32.totalorder %s5198_s14, 0 }
 0x104   : > { %2080 = vmatprep.subr.bf16.mxu0 %v3651_v40  ;;  %2244 = vmatprep.subr.bf16.mxu1 %v3653_v41  ;;  %v3740_v40 = vld [vmem:[%s4717_s3 + $0x308] ss:$16 sps:$4 sm:$0xff]   ;;  %v3745_v41 = vld [vmem:[%s4717_s3 + $0x324] ss:$16 sps:$4 sm:$0xff]   ;;  %s5086_s11 = scalar_lea.hbm %s5199_s15, %s3473_s13 }
 0x105   : > { %p4280_p0 = pnand %p4279_p10, %p5200_p1 }
 0x107   : > { %2081 = vmatpush1.bf16.msra.mxu0 %v3655_v42  ;;  %2245 = vmatpush1.bf16.msra.mxu1 %v3656_v43  ;;  %v3748_v42 = vld [vmem:[%s4717_s3 + $0x32c] ss:$16 sps:$4 sm:$0xff]   ;;  %v3743_v43 = vld [vmem:[%s4717_s3 + $0x320] ss:$16 sps:$4 sm:$0xff]   ;;  %p4281_p5 = pneg %p4280_p0 }
 0x108   : > { %2082 = vmatprep.subr.bf16.mxu0 %v3657_v44  ;;  %2246 = vmatprep.subr.bf16.mxu1 %v3659_v45  ;;  %v3746_v44 = vld [vmem:[%s4717_s3 + $0x328] ss:$16 sps:$4 sm:$0xff]   ;;  %v3751_v45 = vld [vmem:[%s4717_s3 + $0x344] ss:$16 sps:$4 sm:$0xff]  }
 0x10b   : > { %2083 = vmatpush1.bf16.msra.mxu0 %v3661_v47  ;;  %2247 = vmatpush1.bf16.msra.mxu1 %v3662_v49  ;;  %v3749_v47 = vld [vmem:[%s4717_s3 + $0x340] ss:$16 sps:$4 sm:$0xff]   ;;  %v3757_v49 = vld [vmem:[%s4717_s3 + $0x364] ss:$16 sps:$4 sm:$0xff]  }
 0x10c   : > { %2084 = vmatprep.subr.bf16.mxu0 %v3663_v50  ;;  %2248 = vmatprep.subr.bf16.mxu1 %v3665_v51  ;;  %v3760_v50 = vld [vmem:[%s4717_s3 + $0x36c] ss:$16 sps:$4 sm:$0xff]   ;;  %v3755_v51 = vld [vmem:[%s4717_s3 + $0x360] ss:$16 sps:$4 sm:$0xff]  }
 0x10f   : > { %2085 = vmatpush1.bf16.msra.mxu0 %v3667_v52  ;;  %2249 = vmatpush1.bf16.msra.mxu1 %v3668_v53  ;;  %v3758_v52 = vld [vmem:[%s4717_s3 + $0x368] ss:$16 sps:$4 sm:$0xff]   ;;  %v3763_v53 = vld [vmem:[%s4717_s3 + $0x384] ss:$16 sps:$4 sm:$0xff]  }
 0x110   : > { %2086 = vmatprep.subr.bf16.mxu0 %v3669_v54  ;;  %2250 = vmatprep.subr.bf16.mxu1 %v3671_v55  ;;  %v3766_v54 = vld [vmem:[%s4717_s3 + $0x38c] ss:$16 sps:$4 sm:$0xff]   ;;  %v3761_v55 = vld [vmem:[%s4717_s3 + $0x380] ss:$16 sps:$4 sm:$0xff]  }
 0x113   : > { %2087 = vmatpush1.bf16.msra.mxu0 %v3673_v56  ;;  %2251 = vmatpush1.bf16.msra.mxu1 %v3674_v57  ;;  %v3764_v56 = vld [vmem:[%s4717_s3 + $0x388] ss:$16 sps:$4 sm:$0xff]   ;;  %v3769_v57 = vld [vmem:[%s4717_s3 + $0x3a4] ss:$16 sps:$4 sm:$0xff]  }
 0x114   : > { %2088 = vmatprep.subr.bf16.mxu0 %v3675_v58  ;;  %2252 = vmatprep.subr.bf16.mxu1 %v3677_v59  ;;  %v3772_v58 = vld [vmem:[%s4717_s3 + $0x3ac] ss:$16 sps:$4 sm:$0xff]   ;;  %v3767_v59 = vld [vmem:[%s4717_s3 + $0x3a0] ss:$16 sps:$4 sm:$0xff]  }
 0x117   : > { %2089 = vmatpush1.bf16.msra.mxu0 %v3679_v60  ;;  %2253 = vmatpush1.bf16.msra.mxu1 %v3680_v61  ;;  %v3770_v60 = vld [vmem:[%s4717_s3 + $0x3a8] ss:$16 sps:$4 sm:$0xff]   ;;  %v3775_v61 = vld [vmem:[%s4717_s3 + $0x3c4] ss:$16 sps:$4 sm:$0xff]  }
 0x118   : > { %2090 = vmatprep.subr.bf16.mxu0 %v3681_v62  ;;  %2254 = vmatprep.subr.bf16.mxu1 %v3683_v63  ;;  %v3778_v62 = vld [vmem:[%s4717_s3 + $0x3cc] ss:$16 sps:$4 sm:$0xff]   ;;  %v3773_v63 = vld [vmem:[%s4717_s3 + $0x3c0] ss:$16 sps:$4 sm:$0xff]  }
 0x11b   : > { %2091 = vmatpush1.bf16.msra.mxu0 %v3685_v0  ;;  %2255 = vmatpush1.bf16.msra.mxu1 %v3686_v1  ;;  %v3776_v0 = vld [vmem:[%s4717_s3 + $0x3c8] ss:$16 sps:$4 sm:$0xff]   ;;  %v3781_v1 = vld [vmem:[%s4717_s3 + $0x3e4] ss:$16 sps:$4 sm:$0xff]  }
 0x11c   : > { %2101 = vmatprep.subr.bf16.mxu0 %v3691_v2  ;;  %2265 = vmatprep.subr.bf16.mxu1 %v3694_v3  ;;  %v3784_v2 = vld [vmem:[%s4717_s3 + $0x3ec] ss:$16 sps:$4 sm:$0xff]   ;;  %v3779_v3 = vld [vmem:[%s4717_s3 + $0x3e0] ss:$16 sps:$4 sm:$0xff]  }
 0x11e   : > { %2093 = vmatmul.mubr.bf16.vlgmr.msra.gmra.mrb[0].mxu0 %v3134_v4  ;;  %2257 = vmatmul.mubr.bf16.vlgmr.msra.gmra.mrb[0].mxu1 %v3134_v4  ;;  %v3782_v4 = vld [vmem:[%s4717_s3 + $0x3e8] ss:$16 sps:$4 sm:$0xff]  }
 0x11f   : > { %2102 = vmatpush1.bf16.msra.mxu0 %v3689_v5  ;;  %2266 = vmatpush1.bf16.msra.mxu1 %v3692_v6  ;;  %v3789_v5 = vld [vmem:[%s4717_s3 + $0x404] ss:$16 sps:$4 sm:$0xff]   ;;  %v3792_v6 = vld [vmem:[%s4717_s3 + $0x40c] ss:$16 sps:$4 sm:$0xff]  }
 0x120   : > { %2103 = vmatprep.subr.bf16.mxu0 %v3697_v7  ;;  %2267 = vmatprep.subr.bf16.mxu1 %v3700_v8  ;;  %v3136_v7 = vcombine.low %v4824_v29, %v4824_v29  ;;  %v3787_v8 = vld [vmem:[%s4717_s3 + $0x400] ss:$16 sps:$4 sm:$0xff]   ;;  %v3822_v29 = vld [vmem:[%s4717_s3 + $0x4ac] ss:$16 sps:$4 sm:$0xff]  }
 0x121   : > { %2133 = vmatprep.mubr.bf16.mxu0 %v3137_v30  ;;  %2297 = vmatprep.mubr.bf16.mxu1 %v3137_v30  ;;  %v3817_v30 = vld [vmem:[%s4717_s3 + $0x4a0] ss:$16 sps:$4 sm:$0xff]  }
 0x123   : > { %2104 = vmatpush1.bf16.msra.mxu0 %v3695_v9  ;;  %2268 = vmatpush1.bf16.msra.mxu1 %v3698_v10  ;;  %v3790_v9 = vld [vmem:[%s4717_s3 + $0x408] ss:$16 sps:$4 sm:$0xff]   ;;  %v3795_v10 = vld [vmem:[%s4717_s3 + $0x424] ss:$16 sps:$4 sm:$0xff]  }
 0x124   : > { %2105 = vmatprep.subr.bf16.mxu0 %v3703_v11  ;;  %2269 = vmatprep.subr.bf16.mxu1 %v3706_v12  ;;  %v4873_v11 = vld [vmem:[#allocation3 + $0x10] sm:$0xff]  ;;  %v3798_v12 = vld [vmem:[%s4717_s3 + $0x42c] ss:$16 sps:$4 sm:$0xff]  }
 0x127   : > { %2106 = vmatpush1.bf16.msra.mxu0 %v3701_v13  ;;  %2270 = vmatpush1.bf16.msra.mxu1 %v3704_v14  ;;  %v3139_v13 = vcombine.high %v4873_v11, %v4873_v11  ;;  %v3793_v14 = vld [vmem:[%s4717_s3 + $0x420] ss:$16 sps:$4 sm:$0xff]  }
 0x128   : > { %2107 = vmatprep.subr.bf16.mxu0 %v3709_v15  ;;  %2271 = vmatprep.subr.bf16.mxu1 %v3712_v16  ;;  %v3796_v15 = vld [vmem:[%s4717_s3 + $0x428] ss:$16 sps:$4 sm:$0xff]   ;;  %v3801_v16 = vld [vmem:[%s4717_s3 + $0x444] ss:$16 sps:$4 sm:$0xff]  }
 0x12b   : > { %2108 = vmatpush1.bf16.msra.mxu0 %v3707_v17  ;;  %2272 = vmatpush1.bf16.msra.mxu1 %v3710_v18  ;;  %v3804_v17 = vld [vmem:[%s4717_s3 + $0x44c] ss:$16 sps:$4 sm:$0xff]   ;;  %v3799_v18 = vld [vmem:[%s4717_s3 + $0x440] ss:$16 sps:$4 sm:$0xff]  }
 0x12c   : > { %2109 = vmatprep.subr.bf16.mxu0 %v3715_v19  ;;  %2273 = vmatprep.subr.bf16.mxu1 %v3718_v20  ;;  %v3802_v19 = vld [vmem:[%s4717_s3 + $0x448] ss:$16 sps:$4 sm:$0xff]   ;;  %v3807_v20 = vld [vmem:[%s4717_s3 + $0x464] ss:$16 sps:$4 sm:$0xff]  }
 0x12f   : > { %2110 = vmatpush1.bf16.msra.mxu0 %v3713_v21  ;;  %2274 = vmatpush1.bf16.msra.mxu1 %v3716_v22  ;;  %v3810_v21 = vld [vmem:[%s4717_s3 + $0x46c] ss:$16 sps:$4 sm:$0xff]   ;;  %v3805_v22 = vld [vmem:[%s4717_s3 + $0x460] ss:$16 sps:$4 sm:$0xff]  }
 0x130   : > { %2111 = vmatprep.subr.bf16.mxu0 %v3721_v23  ;;  %2275 = vmatprep.subr.bf16.mxu1 %v3724_v24  ;;  %v3808_v23 = vld [vmem:[%s4717_s3 + $0x468] ss:$16 sps:$4 sm:$0xff]   ;;  %v3813_v24 = vld [vmem:[%s4717_s3 + $0x484] ss:$16 sps:$4 sm:$0xff]  }
 0x133   : > { %2112 = vmatpush1.bf16.msra.mxu0 %v3719_v25  ;;  %2276 = vmatpush1.bf16.msra.mxu1 %v3722_v26  ;;  %v3816_v25 = vld [vmem:[%s4717_s3 + $0x48c] ss:$16 sps:$4 sm:$0xff]   ;;  %v3811_v26 = vld [vmem:[%s4717_s3 + $0x480] ss:$16 sps:$4 sm:$0xff]  }
 0x134   : > { %2113 = vmatprep.subr.bf16.mxu0 %v3727_v27  ;;  %2277 = vmatprep.subr.bf16.mxu1 %v3730_v28  ;;  %v3814_v27 = vld [vmem:[%s4717_s3 + $0x488] ss:$16 sps:$4 sm:$0xff]   ;;  %v3819_v28 = vld [vmem:[%s4717_s3 + $0x4a4] ss:$16 sps:$4 sm:$0xff]  }
 0x137   : > { %2114 = vmatpush1.bf16.msra.mxu0 %v3725_v31  ;;  %2278 = vmatpush1.bf16.msra.mxu1 %v3728_v32  ;;  %v3820_v31 = vld [vmem:[%s4717_s3 + $0x4a8] ss:$16 sps:$4 sm:$0xff]   ;;  %v3825_v32 = vld [vmem:[%s4717_s3 + $0x4c4] ss:$16 sps:$4 sm:$0xff]  }
 0x138   : > { %2115 = vmatprep.subr.bf16.mxu0 %v3733_v33  ;;  %2279 = vmatprep.subr.bf16.mxu1 %v3736_v34  ;;  %v3828_v33 = vld [vmem:[%s4717_s3 + $0x4cc] ss:$16 sps:$4 sm:$0xff]   ;;  %v3823_v34 = vld [vmem:[%s4717_s3 + $0x4c0] ss:$16 sps:$4 sm:$0xff]  }
 0x13b   : > { %2116 = vmatpush1.bf16.msra.mxu0 %v3731_v35  ;;  %2280 = vmatpush1.bf16.msra.mxu1 %v3734_v36  ;;  %v3826_v35 = vld [vmem:[%s4717_s3 + $0x4c8] ss:$16 sps:$4 sm:$0xff]   ;;  %v3831_v36 = vld [vmem:[%s4717_s3 + $0x4e4] ss:$16 sps:$4 sm:$0xff]  }
 0x13c   : > { %2117 = vmatprep.subr.bf16.mxu0 %v3739_v37  ;;  %2281 = vmatprep.subr.bf16.mxu1 %v3742_v38  ;;  %v3834_v37 = vld [vmem:[%s4717_s3 + $0x4ec] ss:$16 sps:$4 sm:$0xff]   ;;  %v3829_v38 = vld [vmem:[%s4717_s3 + $0x4e0] ss:$16 sps:$4 sm:$0xff]  }
 0x13f   : > { %2118 = vmatpush1.bf16.msra.mxu0 %v3737_v39  ;;  %2282 = vmatpush1.bf16.msra.mxu1 %v3740_v40  ;;  %v3832_v39 = vld [vmem:[%s4717_s3 + $0x4e8] ss:$16 sps:$4 sm:$0xff]   ;;  %v3837_v40 = vld [vmem:[%s4717_s3 + $0x504] ss:$16 sps:$4 sm:$0xff]  }
 0x140   : > { %2119 = vmatprep.subr.bf16.mxu0 %v3745_v41  ;;  %2283 = vmatprep.subr.bf16.mxu1 %v3748_v42  ;;  %v3840_v41 = vld [vmem:[%s4717_s3 + $0x50c] ss:$16 sps:$4 sm:$0xff]   ;;  %v3835_v42 = vld [vmem:[%s4717_s3 + $0x500] ss:$16 sps:$4 sm:$0xff]  }
 0x143   : > { %2120 = vmatpush1.bf16.msra.mxu0 %v3743_v43  ;;  %2284 = vmatpush1.bf16.msra.mxu1 %v3746_v44  ;;  %v3838_v43 = vld [vmem:[%s4717_s3 + $0x508] ss:$16 sps:$4 sm:$0xff]   ;;  %v3843_v44 = vld [vmem:[%s4717_s3 + $0x524] ss:$16 sps:$4 sm:$0xff]  }
 0x144   : > { %2121 = vmatprep.subr.bf16.mxu0 %v3751_v45  ;;  %2285 = vmatprep.subr.bf16.mxu1 %v3754_v46  ;;  %v3846_v45 = vld [vmem:[%s4717_s3 + $0x52c] ss:$16 sps:$4 sm:$0xff]   ;;  %v3841_v46 = vld [vmem:[%s4717_s3 + $0x520] ss:$16 sps:$4 sm:$0xff]  }
 0x147   : > { %2122 = vmatpush1.bf16.msra.mxu0 %v3749_v47  ;;  %2286 = vmatpush1.bf16.msra.mxu1 %v3752_v48  ;;  %v3844_v47 = vld [vmem:[%s4717_s3 + $0x528] ss:$16 sps:$4 sm:$0xff]   ;;  %v3849_v48 = vld [vmem:[%s4717_s3 + $0x544] ss:$16 sps:$4 sm:$0xff]  }
 0x148   : > { %2123 = vmatprep.subr.bf16.mxu0 %v3757_v49  ;;  %2287 = vmatprep.subr.bf16.mxu1 %v3760_v50  ;;  %v3852_v49 = vld [vmem:[%s4717_s3 + $0x54c] ss:$16 sps:$4 sm:$0xff]   ;;  %v3847_v50 = vld [vmem:[%s4717_s3 + $0x540] ss:$16 sps:$4 sm:$0xff]  }
 0x14b   : > { %2124 = vmatpush1.bf16.msra.mxu0 %v3755_v51  ;;  %2288 = vmatpush1.bf16.msra.mxu1 %v3758_v52  ;;  %v3850_v51 = vld [vmem:[%s4717_s3 + $0x548] ss:$16 sps:$4 sm:$0xff]   ;;  %v3855_v52 = vld [vmem:[%s4717_s3 + $0x564] ss:$16 sps:$4 sm:$0xff]  }
 0x14c   : > { %2125 = vmatprep.subr.bf16.mxu0 %v3763_v53  ;;  %2289 = vmatprep.subr.bf16.mxu1 %v3766_v54  ;;  %v3858_v53 = vld [vmem:[%s4717_s3 + $0x56c] ss:$16 sps:$4 sm:$0xff]   ;;  %v3853_v54 = vld [vmem:[%s4717_s3 + $0x560] ss:$16 sps:$4 sm:$0xff]  }
 0x14f   : > { %2126 = vmatpush1.bf16.msra.mxu0 %v3761_v55  ;;  %2290 = vmatpush1.bf16.msra.mxu1 %v3764_v56  ;;  %v3856_v55 = vld [vmem:[%s4717_s3 + $0x568] ss:$16 sps:$4 sm:$0xff]   ;;  %v3861_v56 = vld [vmem:[%s4717_s3 + $0x584] ss:$16 sps:$4 sm:$0xff]  }
 0x150   : > { %2127 = vmatprep.subr.bf16.mxu0 %v3769_v57  ;;  %2291 = vmatprep.subr.bf16.mxu1 %v3772_v58  ;;  %v3864_v57 = vld [vmem:[%s4717_s3 + $0x58c] ss:$16 sps:$4 sm:$0xff]   ;;  %v3859_v58 = vld [vmem:[%s4717_s3 + $0x580] ss:$16 sps:$4 sm:$0xff]  }
 0x153   : > { %2128 = vmatpush1.bf16.msra.mxu0 %v3767_v59  ;;  %2292 = vmatpush1.bf16.msra.mxu1 %v3770_v60  ;;  %v3862_v59 = vld [vmem:[%s4717_s3 + $0x588] ss:$16 sps:$4 sm:$0xff]   ;;  %v3867_v60 = vld [vmem:[%s4717_s3 + $0x5a4] ss:$16 sps:$4 sm:$0xff]  }
 0x154   : > { %2129 = vmatprep.subr.bf16.mxu0 %v3775_v61  ;;  %2293 = vmatprep.subr.bf16.mxu1 %v3778_v62  ;;  %v3870_v61 = vld [vmem:[%s4717_s3 + $0x5ac] ss:$16 sps:$4 sm:$0xff]   ;;  %v3865_v62 = vld [vmem:[%s4717_s3 + $0x5a0] ss:$16 sps:$4 sm:$0xff]  }
 0x157   : > { %2130 = vmatpush1.bf16.msra.mxu0 %v3773_v63  ;;  %2294 = vmatpush1.bf16.msra.mxu1 %v3776_v0  ;;  %v3868_v63 = vld [vmem:[%s4717_s3 + $0x5a8] ss:$16 sps:$4 sm:$0xff]   ;;  %v3873_v0 = vld [vmem:[%s4717_s3 + $0x5c4] ss:$16 sps:$4 sm:$0xff]  }
 0x158   : > { %2131 = vmatprep.subr.bf16.mxu0 %v3781_v1  ;;  %2295 = vmatprep.subr.bf16.mxu1 %v3784_v2  ;;  %v3876_v1 = vld [vmem:[%s4717_s3 + $0x5cc] ss:$16 sps:$4 sm:$0xff]   ;;  %v3871_v2 = vld [vmem:[%s4717_s3 + $0x5c0] ss:$16 sps:$4 sm:$0xff]  }
 0x15b   : > { %2132 = vmatpush1.bf16.msra.mxu0 %v3779_v3  ;;  %2296 = vmatpush1.bf16.msra.mxu1 %v3782_v4  ;;  %v3874_v3 = vld [vmem:[%s4717_s3 + $0x5c8] ss:$16 sps:$4 sm:$0xff]   ;;  %v3879_v4 = vld [vmem:[%s4717_s3 + $0x5e4] ss:$16 sps:$4 sm:$0xff]  }
 0x15c   : > { %2142 = vmatprep.subr.bf16.mxu0 %v3789_v5  ;;  %2306 = vmatprep.subr.bf16.mxu1 %v3792_v6  ;;  %v3882_v5 = vld [vmem:[%s4717_s3 + $0x5ec] ss:$16 sps:$4 sm:$0xff]   ;;  %v3877_v6 = vld [vmem:[%s4717_s3 + $0x5e0] ss:$16 sps:$4 sm:$0xff]  }
 0x15e   : > { %2134 = vmatmul.mubr.bf16.vlgmr.msra.gmra.mrb[0].mxu0 %v3136_v7  ;;  %2298 = vmatmul.mubr.bf16.vlgmr.msra.gmra.mrb[0].mxu1 %v3136_v7  ;;  %v3880_v7 = vld [vmem:[%s4717_s3 + $0x5e8] ss:$16 sps:$4 sm:$0xff]  }
 0x15f   : > { %2143 = vmatpush1.bf16.msra.mxu0 %v3787_v8  ;;  %2307 = vmatpush1.bf16.msra.mxu1 %v3790_v9  ;;  %v3887_v8 = vld [vmem:[%s4717_s3 + $0x604] ss:$16 sps:$4 sm:$0xff]   ;;  %v3890_v9 = vld [vmem:[%s4717_s3 + $0x60c] ss:$16 sps:$4 sm:$0xff]  }
 0x160   : > { %2144 = vmatprep.subr.bf16.mxu0 %v3795_v10  ;;  %2308 = vmatprep.subr.bf16.mxu1 %v3798_v12  ;;  %v3885_v10 = vld [vmem:[%s4717_s3 + $0x600] ss:$16 sps:$4 sm:$0xff]   ;;  %v3138_v12 = vcombine.low %v4873_v11, %v4873_v11  ;;  %v3894_v11 = vld [vmem:[%s4717_s3 + $0x628] ss:$16 sps:$4 sm:$0xff]  }
 0x161   : > { %2174 = vmatprep.mubr.bf16.mxu0 %v3139_v13  ;;  %2338 = vmatprep.mubr.bf16.mxu1 %v3139_v13  ;;  %v3888_v13 = vld [vmem:[%s4717_s3 + $0x608] ss:$16 sps:$4 sm:$0xff]  }
 0x163   : > { %2145 = vmatpush1.bf16.msra.mxu0 %v3793_v14  ;;  %2309 = vmatpush1.bf16.msra.mxu1 %v3796_v15  ;;  %v4942_v14 = vld [vmem:[#allocation3 + $0x18] sm:$0xff]  ;;  %v3893_v15 = vld [vmem:[%s4717_s3 + $0x624] ss:$16 sps:$4 sm:$0xff]  }
 0x164   : > { %2146 = vmatprep.subr.bf16.mxu0 %v3801_v16  ;;  %2310 = vmatprep.subr.bf16.mxu1 %v3804_v17  ;;  %v3896_v16 = vld [vmem:[%s4717_s3 + $0x62c] ss:$16 sps:$4 sm:$0xff]   ;;  %v3141_v17 = vcombine.high %v4942_v14, %v4942_v14 }
 0x167   : > { %2147 = vmatpush1.bf16.msra.mxu0 %v3799_v18  ;;  %2311 = vmatpush1.bf16.msra.mxu1 %v3802_v19  ;;  %v3891_v18 = vld [vmem:[%s4717_s3 + $0x620] ss:$16 sps:$4 sm:$0xff]   ;;  %v3899_v19 = vld [vmem:[%s4717_s3 + $0x644] ss:$16 sps:$4 sm:$0xff]  }
 0x168   : > { %2148 = vmatprep.subr.bf16.mxu0 %v3807_v20  ;;  %2312 = vmatprep.subr.bf16.mxu1 %v3810_v21  ;;  %v3902_v20 = vld [vmem:[%s4717_s3 + $0x64c] ss:$16 sps:$4 sm:$0xff]   ;;  %v3897_v21 = vld [vmem:[%s4717_s3 + $0x640] ss:$16 sps:$4 sm:$0xff]  }
 0x16b   : > { %2149 = vmatpush1.bf16.msra.mxu0 %v3805_v22  ;;  %2313 = vmatpush1.bf16.msra.mxu1 %v3808_v23  ;;  %v3900_v22 = vld [vmem:[%s4717_s3 + $0x648] ss:$16 sps:$4 sm:$0xff]   ;;  %v4373_v23 = vmov 0  }
 0x16c   : > { %2150 = vmatprep.subr.bf16.mxu0 %v3813_v24  ;;  %2314 = vmatprep.subr.bf16.mxu1 %v3816_v25  ;;  %v3905_v24 = vld [vmem:[%s4717_s3 + $0x664] ss:$16 sps:$4 sm:$0xff]   ;;  %v3908_v25 = vld [vmem:[%s4717_s3 + $0x66c] ss:$16 sps:$4 sm:$0xff]  }
 0x16d   : > { %3590 = vset.pattern.permute.xlu0 %v4373_v23  ;;  %v3986_v23 = vld [vmem:[%s4725_s18 + $0x8] ss:$16 sps:$4 sm:$0xff]  }
 0x16f   : > { %2151 = vmatpush1.bf16.msra.mxu0 %v3811_v26  ;;  %2315 = vmatpush1.bf16.msra.mxu1 %v3814_v27  ;;  %v3903_v26 = vld [vmem:[%s4717_s3 + $0x660] ss:$16 sps:$4 sm:$0xff]   ;;  %v3906_v27 = vld [vmem:[%s4717_s3 + $0x668] ss:$16 sps:$4 sm:$0xff]  }
 0x170   : > { %2152 = vmatprep.subr.bf16.mxu0 %v3819_v28  ;;  %2316 = vmatprep.subr.bf16.mxu1 %v3822_v29  ;;  %v3911_v28 = vld [vmem:[%s4717_s3 + $0x684] ss:$16 sps:$4 sm:$0xff]   ;;  %v3914_v29 = vld [vmem:[%s4717_s3 + $0x68c] ss:$16 sps:$4 sm:$0xff]  }
 0x173   : > { %2153 = vmatpush1.bf16.msra.mxu0 %v3817_v30  ;;  %2317 = vmatpush1.bf16.msra.mxu1 %v3820_v31  ;;  %v3909_v30 = vld [vmem:[%s4717_s3 + $0x680] ss:$16 sps:$4 sm:$0xff]   ;;  %v3912_v31 = vld [vmem:[%s4717_s3 + $0x688] ss:$16 sps:$4 sm:$0xff]  }
 0x174   : > { %2154 = vmatprep.subr.bf16.mxu0 %v3825_v32  ;;  %2318 = vmatprep.subr.bf16.mxu1 %v3828_v33  ;;  %v3917_v32 = vld [vmem:[%s4717_s3 + $0x6a4] ss:$16 sps:$4 sm:$0xff]   ;;  %v3920_v33 = vld [vmem:[%s4717_s3 + $0x6ac] ss:$16 sps:$4 sm:$0xff]  }
 0x177   : > { %2155 = vmatpush1.bf16.msra.mxu0 %v3823_v34  ;;  %2319 = vmatpush1.bf16.msra.mxu1 %v3826_v35  ;;  %v3915_v34 = vld [vmem:[%s4717_s3 + $0x6a0] ss:$16 sps:$4 sm:$0xff]   ;;  %v3918_v35 = vld [vmem:[%s4717_s3 + $0x6a8] ss:$16 sps:$4 sm:$0xff]  }
 0x178   : > { %2156 = vmatprep.subr.bf16.mxu0 %v3831_v36  ;;  %2320 = vmatprep.subr.bf16.mxu1 %v3834_v37  ;;  %v3923_v36 = vld [vmem:[%s4717_s3 + $0x6c4] ss:$16 sps:$4 sm:$0xff]   ;;  %v3926_v37 = vld [vmem:[%s4717_s3 + $0x6cc] ss:$16 sps:$4 sm:$0xff]  }
 0x17b   : > { %2157 = vmatpush1.bf16.msra.mxu0 %v3829_v38  ;;  %2321 = vmatpush1.bf16.msra.mxu1 %v3832_v39  ;;  %v3921_v38 = vld [vmem:[%s4717_s3 + $0x6c0] ss:$16 sps:$4 sm:$0xff]   ;;  %v3924_v39 = vld [vmem:[%s4717_s3 + $0x6c8] ss:$16 sps:$4 sm:$0xff]  }
 0x17c   : > { %2158 = vmatprep.subr.bf16.mxu0 %v3837_v40  ;;  %2322 = vmatprep.subr.bf16.mxu1 %v3840_v41  ;;  %v2878_v40 = vld [vmem:[%s5197_s27] sm:$0xff] }
 0x17d   : > { %v3929_v41 = vld [vmem:[%s4717_s3 + $0x6e4] ss:$16 sps:$4 sm:$0xff]  }
 0x17f   : > { %2159 = vmatpush1.bf16.msra.mxu0 %v3835_v42  ;;  %2323 = vmatpush1.bf16.msra.mxu1 %v3838_v43  ;;  %v3932_v42 = vld [vmem:[%s4717_s3 + $0x6ec] ss:$16 sps:$4 sm:$0xff]   ;;  %v2879_v43 = vmul.f32 %v2878_v40, %v2878_v40 }
 0x180   : > { %2160 = vmatprep.subr.bf16.mxu0 %v3843_v44  ;;  %2324 = vmatprep.subr.bf16.mxu1 %v3846_v45  ;;  %v3927_v45 = vld [vmem:[%s4717_s3 + $0x6e0] ss:$16 sps:$4 sm:$0xff]  }
 0x181   : > { %v2880_v44 = vadd.f32 1.0, %v2879_v43  ;;  %v4016_v43 = vld [vmem:[%s4725_s18 + $0xa8] ss:$16 sps:$4 sm:$0xff]  }
 0x183   : > { %2161 = vmatpush1.bf16.msra.mxu0 %v3841_v46  ;;  %2325 = vmatpush1.bf16.msra.mxu1 %v3844_v47  ;;  %v3930_v46 = vld [vmem:[%s4717_s3 + $0x6e8] ss:$16 sps:$4 sm:$0xff]   ;;  %v3935_v47 = vld [vmem:[%s4717_s3 + $0x704] ss:$16 sps:$4 sm:$0xff]   ;;  %4082 = vrcp.f32 %v2880_v44 }
 0x184   : > { %2162 = vmatprep.subr.bf16.mxu0 %v3849_v48  ;;  %2326 = vmatprep.subr.bf16.mxu1 %v3852_v49  ;;  %v3938_v48 = vld [vmem:[%s4717_s3 + $0x70c] ss:$16 sps:$4 sm:$0xff]   ;;  %4084 = vrsqrt.f32 %v2880_v44  ;;  %v3933_v49 = vld [vmem:[%s4717_s3 + $0x700] ss:$16 sps:$4 sm:$0xff]   ;;  %v4021_v44 = vld [vmem:[%s4725_s18 + $0xc4] ss:$16 sps:$4 sm:$0xff]  }
 0x187   : > { %2163 = vmatpush1.bf16.msra.mxu0 %v3847_v50  ;;  %2327 = vmatpush1.bf16.msra.mxu1 %v3850_v51  ;;  %v3936_v50 = vld [vmem:[%s4717_s3 + $0x708] ss:$16 sps:$4 sm:$0xff]   ;;  %v3941_v51 = vld [vmem:[%s4717_s3 + $0x724] ss:$16 sps:$4 sm:$0xff]  }
 0x188   : > { %2164 = vmatprep.subr.bf16.mxu0 %v3855_v52  ;;  %2328 = vmatprep.subr.bf16.mxu1 %v3858_v53  ;;  %v3944_v52 = vld [vmem:[%s4717_s3 + $0x72c] ss:$16 sps:$4 sm:$0xff]   ;;  %v3939_v53 = vld [vmem:[%s4717_s3 + $0x720] ss:$16 sps:$4 sm:$0xff]  }
 0x18b   : > { %2165 = vmatpush1.bf16.msra.mxu0 %v3853_v54  ;;  %2329 = vmatpush1.bf16.msra.mxu1 %v3856_v55  ;;  %v3942_v54 = vld [vmem:[%s4717_s3 + $0x728] ss:$16 sps:$4 sm:$0xff]   ;;  %v3947_v55 = vld [vmem:[%s4717_s3 + $0x744] ss:$16 sps:$4 sm:$0xff]  }
 0x18c   : > { %2166 = vmatprep.subr.bf16.mxu0 %v3861_v56  ;;  %2330 = vmatprep.subr.bf16.mxu1 %v3864_v57  ;;  %v3950_v56 = vld [vmem:[%s4717_s3 + $0x74c] ss:$16 sps:$4 sm:$0xff]  }
 0x18d   : > { %v4083_v57 = vpop.eup %4082 }
 0x18e   : > { %2913 = vperm.xlu0 %3590, %v4083_v57   ;;  %v4042_v57 = vld [vmem:[%s4725_s18 + $0x12c] ss:$16 sps:$4 sm:$0xff]  }
 0x18f   : > { %2167 = vmatpush1.bf16.msra.mxu0 %v3859_v58  ;;  %2331 = vmatpush1.bf16.msra.mxu1 %v3862_v59  ;;  %v4085_v58 = vpop.eup %4084  ;;  %v3945_v59 = vld [vmem:[%s4717_s3 + $0x740] ss:$16 sps:$4 sm:$0xff]  }
 0x190   : > { %2168 = vmatprep.subr.bf16.mxu0 %v3867_v60  ;;  %2332 = vmatprep.subr.bf16.mxu1 %v3870_v61  ;;  %v3948_v60 = vld [vmem:[%s4717_s3 + $0x748] ss:$16 sps:$4 sm:$0xff]   ;;  %v3953_v61 = vld [vmem:[%s4717_s3 + $0x764] ss:$16 sps:$4 sm:$0xff]  }
 0x193   : > { %2169 = vmatpush1.bf16.msra.mxu0 %v3865_v62  ;;  %2333 = vmatpush1.bf16.msra.mxu1 %v3868_v63  ;;  %v3956_v62 = vld [vmem:[%s4717_s3 + $0x76c] ss:$16 sps:$4 sm:$0xff]   ;;  %v2884_v63 = vmul.f32 %v4085_v58, %v2878_v40  ;;  %v4015_v40 = vld [vmem:[%s4725_s18 + $0xa4] ss:$16 sps:$4 sm:$0xff]   ;;  %v4037_v58 = vld [vmem:[%s4725_s18 + $0x120] ss:$16 sps:$4 sm:$0xff]  }
 0x194   : > { %2170 = vmatprep.subr.bf16.mxu0 %v3873_v0  ;;  %2334 = vmatprep.subr.bf16.mxu1 %v3876_v1  ;;  %v3951_v0 = vld [vmem:[%s4717_s3 + $0x760] ss:$16 sps:$4 sm:$0xff]   ;;  %v3954_v1 = vld [vmem:[%s4717_s3 + $0x768] ss:$16 sps:$4 sm:$0xff]  }
 0x195   : > { %2922 = vperm.xlu0 %3590, %v2884_v63   ;;  %v4046_v63 = vld [vmem:[%s4725_s18 + $0x148] ss:$16 sps:$4 sm:$0xff]  }
 0x197   : > { %2171 = vmatpush1.bf16.msra.mxu0 %v3871_v2  ;;  %2335 = vmatpush1.bf16.msra.mxu1 %v3874_v3  ;;  %v3959_v2 = vld [vmem:[%s4717_s3 + $0x784] ss:$16 sps:$4 sm:$0xff]   ;;  %v3962_v3 = vld [vmem:[%s4717_s3 + $0x78c] ss:$16 sps:$4 sm:$0xff]  }
 0x198   : > { %2172 = vmatprep.subr.bf16.mxu0 %v3879_v4  ;;  %2336 = vmatprep.subr.bf16.mxu1 %v3882_v5  ;;  %v3957_v4 = vld [vmem:[%s4717_s3 + $0x780] ss:$16 sps:$4 sm:$0xff]   ;;  %v3960_v5 = vld [vmem:[%s4717_s3 + $0x788] ss:$16 sps:$4 sm:$0xff]  }
 0x19b   : > { %2173 = vmatpush1.bf16.msra.mxu0 %v3877_v6  ;;  %2337 = vmatpush1.bf16.msra.mxu1 %v3880_v7  ;;  %v3965_v6 = vld [vmem:[%s4717_s3 + $0x7a4] ss:$16 sps:$4 sm:$0xff]   ;;  %v3968_v7 = vld [vmem:[%s4717_s3 + $0x7ac] ss:$16 sps:$4 sm:$0xff]  }
 0x19c   : > { %2183 = vmatprep.subr.bf16.mxu0 %v3887_v8  ;;  %2347 = vmatprep.subr.bf16.mxu1 %v3890_v9  ;;  %v3963_v8 = vld [vmem:[%s4717_s3 + $0x7a0] ss:$16 sps:$4 sm:$0xff]   ;;  %v3966_v9 = vld [vmem:[%s4717_s3 + $0x7a8] ss:$16 sps:$4 sm:$0xff]  }
 0x19e   : > { %2175 = vmatmul.mubr.bf16.vlgmr.msra.gmra.mrb[0].mxu0 %v3138_v12  ;;  %2339 = vmatmul.mubr.bf16.vlgmr.msra.gmra.mrb[0].mxu1 %v3138_v12  ;;  %v3974_v12 = vld [vmem:[%s4717_s3 + $0x7cc] ss:$16 sps:$4 sm:$0xff]  }
 0x19f   : > { %2184 = vmatpush1.bf16.msra.mxu0 %v3885_v10  ;;  %2348 = vmatpush1.bf16.msra.mxu1 %v3888_v13  ;;  %v3971_v10 = vld [vmem:[%s4717_s3 + $0x7c4] ss:$16 sps:$4 sm:$0xff]   ;;  %v3969_v13 = vld [vmem:[%s4717_s3 + $0x7c0] ss:$16 sps:$4 sm:$0xff]  }
 0x1a0   : > { %2185 = vmatprep.subr.bf16.mxu0 %v3893_v15  ;;  %2349 = vmatprep.subr.bf16.mxu1 %v3896_v16  ;;  %v3972_v15 = vld [vmem:[%s4717_s3 + $0x7c8] ss:$16 sps:$4 sm:$0xff]   ;;  %v3977_v16 = vld [vmem:[%s4717_s3 + $0x7e4] ss:$16 sps:$4 sm:$0xff]  }
 0x1a1   : > { %2215 = vmatprep.mubr.bf16.mxu0 %v3141_v17  ;;  %2379 = vmatprep.mubr.bf16.mxu1 %v3141_v17  ;;  %v3980_v17 = vld [vmem:[%s4717_s3 + $0x7ec] ss:$16 sps:$4 sm:$0xff]  }
 0x1a3   : > { %2186 = vmatpush1.bf16.msra.mxu0 %v3891_v18  ;;  %2350 = vmatpush1.bf16.msra.mxu1 %v3894_v11  ;;  %v3975_v18 = vld [vmem:[%s4717_s3 + $0x7e0] ss:$16 sps:$4 sm:$0xff]   ;;  %v3978_v11 = vld [vmem:[%s4717_s3 + $0x7e8] ss:$16 sps:$4 sm:$0xff]  }
 0x1a4   : > { %2187 = vmatprep.subr.bf16.mxu0 %v3899_v19  ;;  %2351 = vmatprep.subr.bf16.mxu1 %v3902_v20  ;;  %v3985_v19 = vld [vmem:[%s4725_s18 + $0x4] ss:$16 sps:$4 sm:$0xff]   ;;  %v3988_v20 = vld [vmem:[%s4725_s18 + $0xc] ss:$16 sps:$4 sm:$0xff]  }
 0x1a7   : > { %2188 = vmatpush1.bf16.msra.mxu0 %v3897_v21  ;;  %2352 = vmatpush1.bf16.msra.mxu1 %v3900_v22  ;;  %v3140_v21 = vcombine.low %v4942_v14, %v4942_v14  ;;  %v3983_v22 = vld [vmem:[%s4725_s18] ss:$16 sps:$4 sm:$0xff]  }
 0x1a8   : > { %2189 = vmatprep.subr.bf16.mxu0 %v3905_v24  ;;  %2353 = vmatprep.subr.bf16.mxu1 %v3908_v25  ;;  %v3991_v24 = vld [vmem:[%s4725_s18 + $0x24] ss:$16 sps:$4 sm:$0xff]   ;;  %v3994_v25 = vld [vmem:[%s4725_s18 + $0x2c] ss:$16 sps:$4 sm:$0xff]   ;;  %v3989_v14 = vld [vmem:[%s4725_s18 + $0x20] ss:$16 sps:$4 sm:$0xff]  }
 0x1ab   : > { %2190 = vmatpush1.bf16.msra.mxu0 %v3903_v26  ;;  %2354 = vmatpush1.bf16.msra.mxu1 %v3906_v27  ;;  %v4081_v26 = vld [vmem:[#allocation8 + $0x4] ss:$8 sps:$4 sm:$0xff]   ;;  %v3992_v27 = vld [vmem:[%s4725_s18 + $0x28] ss:$16 sps:$4 sm:$0xff]  }
 0x1ac   : > { %2191 = vmatprep.subr.bf16.mxu0 %v3911_v28  ;;  %2355 = vmatprep.subr.bf16.mxu1 %v3914_v29  ;;  %v3997_v28 = vld [vmem:[%s4725_s18 + $0x44] ss:$16 sps:$4 sm:$0xff]   ;;  %v4000_v29 = vld [vmem:[%s4725_s18 + $0x4c] ss:$16 sps:$4 sm:$0xff]  }
 0x1af   : > { %2192 = vmatpush1.bf16.msra.mxu0 %v3909_v30  ;;  %2356 = vmatpush1.bf16.msra.mxu1 %v3912_v31  ;;  %v3995_v30 = vld [vmem:[%s4725_s18 + $0x40] ss:$16 sps:$4 sm:$0xff]   ;;  %v3998_v31 = vld [vmem:[%s4725_s18 + $0x48] ss:$16 sps:$4 sm:$0xff]  }
 0x1b0   : > { %2193 = vmatprep.subr.bf16.mxu0 %v3917_v32  ;;  %2357 = vmatprep.subr.bf16.mxu1 %v3920_v33  ;;  %v4003_v32 = vld [vmem:[%s4725_s18 + $0x64] ss:$16 sps:$4 sm:$0xff]   ;;  %v4006_v33 = vld [vmem:[%s4725_s18 + $0x6c] ss:$16 sps:$4 sm:$0xff]  }
 0x1b3   : > { %2194 = vmatpush1.bf16.msra.mxu0 %v3915_v34  ;;  %2358 = vmatpush1.bf16.msra.mxu1 %v3918_v35  ;;  %v4001_v34 = vld [vmem:[%s4725_s18 + $0x60] ss:$16 sps:$4 sm:$0xff]   ;;  %v4004_v35 = vld [vmem:[%s4725_s18 + $0x68] ss:$16 sps:$4 sm:$0xff]  }
 0x1b4   : > { %2195 = vmatprep.subr.bf16.mxu0 %v3923_v36  ;;  %2359 = vmatprep.subr.bf16.mxu1 %v3926_v37  ;;  %v4009_v36 = vld [vmem:[%s4725_s18 + $0x84] ss:$16 sps:$4 sm:$0xff]   ;;  %v4012_v37 = vld [vmem:[%s4725_s18 + $0x8c] ss:$16 sps:$4 sm:$0xff]  }
 0x1b7   : > { %2196 = vmatpush1.bf16.msra.mxu0 %v3921_v38  ;;  %2360 = vmatpush1.bf16.msra.mxu1 %v3924_v39  ;;  %v4007_v38 = vld [vmem:[%s4725_s18 + $0x80] ss:$16 sps:$4 sm:$0xff]   ;;  %v4010_v39 = vld [vmem:[%s4725_s18 + $0x88] ss:$16 sps:$4 sm:$0xff]  }
 0x1b8   : > { %2197 = vmatprep.subr.bf16.mxu0 %v3929_v41  ;;  %2361 = vmatprep.subr.bf16.mxu1 %v3932_v42  ;;  %v4018_v41 = vld [vmem:[%s4725_s18 + $0xac] ss:$16 sps:$4 sm:$0xff]   ;;  %v4013_v42 = vld [vmem:[%s4725_s18 + $0xa0] ss:$16 sps:$4 sm:$0xff]  }
 0x1bb   : > { %2198 = vmatpush1.bf16.msra.mxu0 %v3927_v45  ;;  %2362 = vmatpush1.bf16.msra.mxu1 %v3930_v46  ;;  %v4024_v45 = vld [vmem:[%s4725_s18 + $0xcc] ss:$16 sps:$4 sm:$0xff]   ;;  %v4019_v46 = vld [vmem:[%s4725_s18 + $0xc0] ss:$16 sps:$4 sm:$0xff]  }
 0x1bc   : > { %2199 = vmatprep.subr.bf16.mxu0 %v3935_v47  ;;  %2363 = vmatprep.subr.bf16.mxu1 %v3938_v48  ;;  %v4022_v47 = vld [vmem:[%s4725_s18 + $0xc8] ss:$16 sps:$4 sm:$0xff]   ;;  %v4027_v48 = vld [vmem:[%s4725_s18 + $0xe4] ss:$16 sps:$4 sm:$0xff]  }
 0x1bf   : > { %2200 = vmatpush1.bf16.msra.mxu0 %v3933_v49  ;;  %2364 = vmatpush1.bf16.msra.mxu1 %v3936_v50  ;;  %v4030_v49 = vld [vmem:[%s4725_s18 + $0xec] ss:$16 sps:$4 sm:$0xff]   ;;  %v4025_v50 = vld [vmem:[%s4725_s18 + $0xe0] ss:$16 sps:$4 sm:$0xff]  }
 0x1c0   : > { %2201 = vmatprep.subr.bf16.mxu0 %v3941_v51  ;;  %2365 = vmatprep.subr.bf16.mxu1 %v3944_v52  ;;  %v4028_v51 = vld [vmem:[%s4725_s18 + $0xe8] ss:$16 sps:$4 sm:$0xff]   ;;  %v4033_v52 = vld [vmem:[%s4725_s18 + $0x104] ss:$16 sps:$4 sm:$0xff]  }
 0x1c3   : > { %2202 = vmatpush1.bf16.msra.mxu0 %v3939_v53  ;;  %2366 = vmatpush1.bf16.msra.mxu1 %v3942_v54  ;;  %v4036_v53 = vld [vmem:[%s4725_s18 + $0x10c] ss:$16 sps:$4 sm:$0xff]   ;;  %v4031_v54 = vld [vmem:[%s4725_s18 + $0x100] ss:$16 sps:$4 sm:$0xff]  }
 0x1c4   : > { %2203 = vmatprep.subr.bf16.mxu0 %v3947_v55  ;;  %2367 = vmatprep.subr.bf16.mxu1 %v3950_v56  ;;  %v4034_v55 = vld [vmem:[%s4725_s18 + $0x108] ss:$16 sps:$4 sm:$0xff]   ;;  %v4039_v56 = vld [vmem:[%s4725_s18 + $0x124] ss:$16 sps:$4 sm:$0xff]  }
 0x1c7   : > { %2204 = vmatpush1.bf16.msra.mxu0 %v3945_v59  ;;  %2368 = vmatpush1.bf16.msra.mxu1 %v3948_v60  ;;  %v4040_v59 = vld [vmem:[%s4725_s18 + $0x128] ss:$16 sps:$4 sm:$0xff]   ;;  %v4045_v60 = vld [vmem:[%s4725_s18 + $0x144] ss:$16 sps:$4 sm:$0xff]  }
 0x1c8   : > { %2205 = vmatprep.subr.bf16.mxu0 %v3953_v61  ;;  %2369 = vmatprep.subr.bf16.mxu1 %v3956_v62  ;;  %v4048_v61 = vld [vmem:[%s4725_s18 + $0x14c] ss:$16 sps:$4 sm:$0xff]   ;;  %v4043_v62 = vld [vmem:[%s4725_s18 + $0x140] ss:$16 sps:$4 sm:$0xff]  }
 0x1cb   : > { %2206 = vmatpush1.bf16.msra.mxu0 %v3951_v0  ;;  %2370 = vmatpush1.bf16.msra.mxu1 %v3954_v1  ;;  %v4051_v0 = vld [vmem:[%s4725_s18 + $0x164] ss:$16 sps:$4 sm:$0xff]   ;;  %v4054_v1 = vld [vmem:[%s4725_s18 + $0x16c] ss:$16 sps:$4 sm:$0xff]  }
 0x1cc   : > { %2207 = vmatprep.subr.bf16.mxu0 %v3959_v2  ;;  %2371 = vmatprep.subr.bf16.mxu1 %v3962_v3  ;;  %v4049_v2 = vld [vmem:[%s4725_s18 + $0x160] ss:$16 sps:$4 sm:$0xff]   ;;  %v4052_v3 = vld [vmem:[%s4725_s18 + $0x168] ss:$16 sps:$4 sm:$0xff]  }
 0x1cf   : > { %2208 = vmatpush1.bf16.msra.mxu0 %v3957_v4  ;;  %2372 = vmatpush1.bf16.msra.mxu1 %v3960_v5  ;;  %v4057_v4 = vld [vmem:[%s4725_s18 + $0x184] ss:$16 sps:$4 sm:$0xff]   ;;  %v4060_v5 = vld [vmem:[%s4725_s18 + $0x18c] ss:$16 sps:$4 sm:$0xff]  }
 0x1d0   : > { %2209 = vmatprep.subr.bf16.mxu0 %v3965_v6  ;;  %2373 = vmatprep.subr.bf16.mxu1 %v3968_v7  ;;  %v4055_v6 = vld [vmem:[%s4725_s18 + $0x180] ss:$16 sps:$4 sm:$0xff]   ;;  %v4058_v7 = vld [vmem:[%s4725_s18 + $0x188] ss:$16 sps:$4 sm:$0xff]  }
 0x1d3   : > { %2210 = vmatpush1.bf16.msra.mxu0 %v3963_v8  ;;  %2374 = vmatpush1.bf16.msra.mxu1 %v3966_v9  ;;  %v4063_v8 = vld [vmem:[%s4725_s18 + $0x1a4] ss:$16 sps:$4 sm:$0xff]   ;;  %v4066_v9 = vld [vmem:[%s4725_s18 + $0x1ac] ss:$16 sps:$4 sm:$0xff]  }
 0x1d4   : > { %2211 = vmatprep.subr.bf16.mxu0 %v3971_v10  ;;  %2375 = vmatprep.subr.bf16.mxu1 %v3974_v12  ;;  %v4061_v10 = vld [vmem:[%s4725_s18 + $0x1a0] ss:$16 sps:$4 sm:$0xff]   ;;  %v4064_v12 = vld [vmem:[%s4725_s18 + $0x1a8] ss:$16 sps:$4 sm:$0xff]  }
 0x1d7   : > { %2212 = vmatpush1.bf16.msra.mxu0 %v3969_v13  ;;  %2376 = vmatpush1.bf16.msra.mxu1 %v3972_v15  ;;  %v4069_v13 = vld [vmem:[%s4725_s18 + $0x1c4] ss:$16 sps:$4 sm:$0xff]   ;;  %v4072_v15 = vld [vmem:[%s4725_s18 + $0x1cc] ss:$16 sps:$4 sm:$0xff]  }
 0x1d8   : > { %2213 = vmatprep.subr.bf16.mxu0 %v3977_v16  ;;  %2377 = vmatprep.subr.bf16.mxu1 %v3980_v17  ;;  %v4067_v16 = vld [vmem:[%s4725_s18 + $0x1c0] ss:$16 sps:$4 sm:$0xff]   ;;  %v4070_v17 = vld [vmem:[%s4725_s18 + $0x1c8] ss:$16 sps:$4 sm:$0xff]  }
 0x1db   : > { %2214 = vmatpush1.bf16.msra.mxu0 %v3975_v18  ;;  %2378 = vmatpush1.bf16.msra.mxu1 %v3978_v11  ;;  %v4075_v18 = vld [vmem:[%s4725_s18 + $0x1e4] ss:$16 sps:$4 sm:$0xff]   ;;  %v4078_v11 = vld [vmem:[%s4725_s18 + $0x1ec] ss:$16 sps:$4 sm:$0xff]  }
 0x1dc   : > { %2784 = vmatprep.subr.bf16.mxu0 %v3985_v19  ;;  %2827 = vmatprep.subr.bf16.mxu1 %v3988_v20  ;;  %v4073_v19 = vld [vmem:[%s4725_s18 + $0x1e0] ss:$16 sps:$4 sm:$0xff]   ;;  %v4076_v20 = vld [vmem:[%s4725_s18 + $0x1e8] ss:$16 sps:$4 sm:$0xff]  }
 0x1de   : > { %2216 = vmatmul.mubr.bf16.vlgmr.msra.gmra.mrb[0].mxu0 %v3140_v21  ;;  %2380 = vmatmul.mubr.bf16.vlgmr.msra.gmra.mrb[0].mxu1 %v3140_v21  ;;  %v4079_v21 = vld [vmem:[#allocation8] ss:$8 sps:$4 sm:$0xff]  }
 0x1df   : > { %2785 = vmatpush1.bf16.msra.mxu0 %v3983_v22  ;;  %2828 = vmatpush1.bf16.msra.mxu1 %v3986_v23 }
 0x1e0   : > { %2786 = vmatprep.subr.bf16.mxu0 %v3991_v24  ;;  %2829 = vmatprep.subr.bf16.mxu1 %v3994_v25 }
 0x1e1   : > { %2816 = vmatprep.mubr.bf16.mxu0 %v4081_v26  ;;  %2859 = vmatprep.mubr.bf16.mxu1 %v4081_v26 }
 0x1e3   : > { %2787 = vmatpush1.bf16.msra.mxu0 %v3989_v14  ;;  %2830 = vmatpush1.bf16.msra.mxu1 %v3992_v27 }
 0x1e4   : > { %2788 = vmatprep.subr.bf16.mxu0 %v3997_v28  ;;  %2831 = vmatprep.subr.bf16.mxu1 %v4000_v29  ;;  %v732_v29 = vlaneseq }
 0x1e7   : > { %2789 = vmatpush1.bf16.msra.mxu0 %v3995_v30  ;;  %2832 = vmatpush1.bf16.msra.mxu1 %v3998_v31  ;;  %v733_v30 = vshrl.u32 %v732_v29, 7 }
 0x1e8   : > { %2790 = vmatprep.subr.bf16.mxu0 %v4003_v32  ;;  %2833 = vmatprep.subr.bf16.mxu1 %v4006_v33  ;;  %v730_v33 = vld [vmem:[%s4728_s19] sm:$0xf] }
 0x1e9   : > { %v734_v31 = vsub.s32 0, %v733_v30  ;;  %v742_v32 = vsub.s32 2, %v733_v30 }
 0x1eb   : > { %2791 = vmatpush1.bf16.msra.mxu0 %v4001_v34  ;;  %2834 = vmatpush1.bf16.msra.mxu1 %v4004_v35  ;;  %v738_v34 = vsub.s32 1, %v733_v30  ;;  %v746_v35 = vsub.s32 3, %v733_v30 }
 0x1ec   : > { %2792 = vmatprep.subr.bf16.mxu0 %v4009_v36  ;;  %2835 = vmatprep.subr.bf16.mxu1 %v4012_v37  ;;  %v735_v36 = vrot.slane %v730_v33, %v734_v31  ;;  %v743_v37 = vrot.slane %v730_v33, %v742_v32 }
 0x1ef   : > { %2793 = vmatpush1.bf16.msra.mxu0 %v4007_v38  ;;  %2836 = vmatpush1.bf16.msra.mxu1 %v4010_v39  ;;  %v739_v38 = vrot.slane %v730_v33, %v738_v34  ;;  %v747_v39 = vrot.slane %v730_v33, %v746_v35 }
 0x1f0   : > { %2794 = vmatprep.subr.bf16.mxu0 %v4015_v40  ;;  %2837 = vmatprep.subr.bf16.mxu1 %v4018_v41 }
 0x1f3   : > { %2795 = vmatpush1.bf16.msra.mxu0 %v4013_v42  ;;  %2838 = vmatpush1.bf16.msra.mxu1 %v4016_v43 }
 0x1f4   : > { %2796 = vmatprep.subr.bf16.mxu0 %v4021_v44  ;;  %2839 = vmatprep.subr.bf16.mxu1 %v4024_v45 }
 0x1f7   : > { %2797 = vmatpush1.bf16.msra.mxu0 %v4019_v46  ;;  %2840 = vmatpush1.bf16.msra.mxu1 %v4022_v47 }
 0x1f8   : > { %2798 = vmatprep.subr.bf16.mxu0 %v4027_v48  ;;  %2841 = vmatprep.subr.bf16.mxu1 %v4030_v49 }
 0x1fb   : > { %2799 = vmatpush1.bf16.msra.mxu0 %v4025_v50  ;;  %2842 = vmatpush1.bf16.msra.mxu1 %v4028_v51 }
 0x1fc   : > { %2800 = vmatprep.subr.bf16.mxu0 %v4033_v52  ;;  %2843 = vmatprep.subr.bf16.mxu1 %v4036_v53 }
 0x1ff   : > { %2801 = vmatpush1.bf16.msra.mxu0 %v4031_v54  ;;  %2844 = vmatpush1.bf16.msra.mxu1 %v4034_v55 }
 0x200   : > { %2802 = vmatprep.subr.bf16.mxu0 %v4039_v56  ;;  %2845 = vmatprep.subr.bf16.mxu1 %v4042_v57 }
 0x203   : > { %2803 = vmatpush1.bf16.msra.mxu0 %v4037_v58  ;;  %2846 = vmatpush1.bf16.msra.mxu1 %v4040_v59 }
 0x204   : > { %2804 = vmatprep.subr.bf16.mxu0 %v4045_v60  ;;  %2847 = vmatprep.subr.bf16.mxu1 %v4048_v61 }
 0x207   : > { %2805 = vmatpush1.bf16.msra.mxu0 %v4043_v62  ;;  %2848 = vmatpush1.bf16.msra.mxu1 %v4046_v63 }
 0x208   : > { %2806 = vmatprep.subr.bf16.mxu0 %v4051_v0  ;;  %2849 = vmatprep.subr.bf16.mxu1 %v4054_v1 }
 0x20b   : > { %2807 = vmatpush1.bf16.msra.mxu0 %v4049_v2  ;;  %2850 = vmatpush1.bf16.msra.mxu1 %v4052_v3  ;;  %v2898_v2 = vstv %s2885_s28 }
 0x20c   : > { %2808 = vmatprep.subr.bf16.mxu0 %v4057_v4  ;;  %2851 = vmatprep.subr.bf16.mxu1 %v4060_v5 }
 0x20d   : > { %v2914_v1 = vpop.permute.xlu0 %2913 }
 0x20f   : > { %2809 = vmatpush1.bf16.msra.mxu0 %v4055_v6  ;;  %2852 = vmatpush1.bf16.msra.mxu1 %v4058_v7 }
 0x210   : > { %2810 = vmatprep.subr.bf16.mxu0 %v4063_v8  ;;  %2853 = vmatprep.subr.bf16.mxu1 %v4066_v9 }
 0x213   : > { %2811 = vmatpush1.bf16.msra.mxu0 %v4061_v10  ;;  %2854 = vmatpush1.bf16.msra.mxu1 %v4064_v12  ;;  %v2907_v10 = vld [vmem:[%s4706_s16] sm:$0xff] }
 0x214   : > { %2812 = vmatprep.subr.bf16.mxu0 %v4069_v13  ;;  %2855 = vmatprep.subr.bf16.mxu1 %v4072_v15  ;;  %v2909_v15 = vld [vmem:[%s4706_s16 + $0x10] sm:$0xff] }
 0x217   : > { %2813 = vmatpush1.bf16.msra.mxu0 %v4067_v16  ;;  %2856 = vmatpush1.bf16.msra.mxu1 %v4070_v17 }
 0x218   : > { %2814 = vmatprep.subr.bf16.mxu0 %v4075_v18  ;;  %2857 = vmatprep.subr.bf16.mxu1 %v4078_v11  ;;  %v2908_v18 = vld [vmem:[%s4706_s16 + $0x8] sm:$0xff]  ;;  %v2923_v11 = vpop.permute.xlu0 %2922 }
 0x21b   : > { %2815 = vmatpush1.bf16.msra.mxu0 %v4073_v19  ;;  %2858 = vmatpush1.bf16.msra.mxu1 %v4076_v20 }
 0x21e   : > { %2817 = vmatmul.mubr.bf16.vlgmr.msra.gmra.mrb[4].mxu0 %v4079_v21  ;;  %2860 = vmatmul.mubr.bf16.vlgmr.msra.gmra.mrb[4].mxu1 %v4079_v21  ;;  %v2910_v21 = vld [vmem:[%s4706_s16 + $0x18] sm:$0xff]  ;;  %s4282_s16 = sshll.u32 %s4374_s21, 4  ;;  %s4283_s16 = int_to_ptr.vmem [resolvable:$false] %s4282_s16 }
 0x21f   : > { %v2919_v30 = vmul.f32 %v2914_v1, %v2910_v21  ;;  %s4284_s20 = scalar_lea.vmem %s4283_s16, 1024  ;;  %p4285_p4 = scmp.lt.s32.totalorder %s5088_s25, %s4283_s16 }
 0x220   : > { %p4286_p11 = scmp.lt.s32.totalorder %s4284_s20, %s4278_s24 }
 0x222   : > { %p4287_p2 = por %p4286_p11, %p4285_p4 }
 0x224   : > { %p4288_p7 = pnand %p4287_p2, %p4281_p5 }
 0x2b1   : > { %v2217_v22 = vpop.f32.mrb[0].mxu0  ;;  %v2381_v23 = vpop.f32.mrb[0].mxu1 }
 0x2b2   : > { %v2219_v24 = vpop.f32.mrb[1].mxu0  ;;  %v2383_v25 = vpop.f32.mrb[1].mxu1  ;;  %v3474_v40 = vadd.f32 %v2217_v22, %v735_v36  ;;  %v3476_v41 = vadd.f32 %v2381_v23, %v743_v37  ;;  %v2916_v22 = vmul.f32 %v2914_v1, %v2907_v10 }
 0x2b3   : > { %v2221_v26 = vpop.f32.mrb[2].mxu0  ;;  %v2385_v14 = vpop.f32.mrb[2].mxu1  ;;  %v3475_v42 = vadd.f32 %v2219_v24, %v739_v38  ;;  %v3477_v43 = vadd.f32 %v2383_v25, %v747_v39  ;;  %v2918_v25 = vmul.f32 %v2914_v1, %v2909_v15 }
 0x2b4   : > { %v2222_v27 = vpop.f32.mrb[3].mxu0  ;;  %v2386_v28 = vpop.f32.mrb[3].mxu1 }
 0x2b5   : > { %v2917_v27 = vmul.f32 %v2914_v1, %v2908_v18 }
 0x2f1   : > { %v2818_v44 = vpop.f32.mrb[4].mxu0  ;;  %v2861_v45 = vpop.f32.mrb[4].mxu1 }
 0x2f2   : > { %v2870_v46 = vadd.f32 %v3474_v40, %v2818_v44  ;;  %v2872_v47 = vadd.f32 %v3476_v41, %v2861_v45  ;;  %v2820_v48 = vpop.f32.mrb[5].mxu0  ;;  %v2863_v49 = vpop.f32.mrb[5].mxu1 }
 0x2f3   : > { %v2871_v50 = vadd.f32 %v3475_v42, %v2820_v48  ;;  %v2873_v51 = vadd.f32 %v3477_v43, %v2863_v49  ;;  %v2822_v52 = vpop.f32.mrb[6].mxu0  ;;  %v2865_v53 = vpop.f32.mrb[6].mxu1 }
 0x2f4   : > { %4086 = vtanh.f32 %v2870_v46  ;;  %v2874_v54 = vadd.f32 %v3474_v40, %v2822_v52  ;;  %v2876_v55 = vadd.f32 %v3476_v41, %v2865_v53  ;;  %v2824_v56 = vpop.f32.mrb[7].mxu0  ;;  %v2867_v57 = vpop.f32.mrb[7].mxu1 }
 0x2f5   : > { %4088 = vtanh.f32 %v2872_v47  ;;  %v2875_v58 = vadd.f32 %v3475_v42, %v2824_v56  ;;  %v2877_v59 = vadd.f32 %v3477_v43, %v2867_v57 }
 0x2f6   : > { %4090 = vtanh.f32 %v2871_v50 }
 0x2f7   : > { %4092 = vtanh.f32 %v2873_v51 }
 0x2f8   : > { %4094 = vtanh.f32 %v2874_v54 }
 0x2f9   : > { %4096 = vtanh.f32 %v2876_v55 }
 0x2fa   : > { %4098 = vtanh.f32 %v2875_v58 }
 0x2fb   : > { %4100 = vtanh.f32 %v2877_v59 }
 0x2fe   : > { %v4087_v60 = vpop.eup %4086 }
 0x2ff   : > { %v4089_v61 = vpop.eup %4088 }
 0x300   : > { %v4091_v62 = vpop.eup %4090 }
 0x301   : > { %v4093_v63 = vpop.eup %4092 }
 0x302   : > { %v4095_v0 = vpop.eup %4094 }
 0x303   : > { %v4097_v3 = vpop.eup %4096  ;;  %v2894_v4 = vsub.f32 %v4095_v0, %v4087_v60 }
 0x304   : > { %v4099_v5 = vpop.eup %4098  ;;  %v2896_v6 = vsub.f32 %v4097_v3, %v4089_v61 }
 0x305   : > { %v4101_v7 = vpop.eup %4100  ;;  %v2895_v8 = vsub.f32 %v4099_v5, %v4091_v62  ;;  %v2899_v9 = vmul.f32 %v2898_v2, %v2894_v4 }
 0x306   : > { %v2897_v12 = vsub.f32 %v4101_v7, %v4093_v63  ;;  %v2901_v13 = vmul.f32 %v2898_v2, %v2896_v6 }
 0x307   : > { %v2900_v16 = vmul.f32 %v2898_v2, %v2895_v8  ;;  %v2903_v17 = vadd.f32 %v4087_v60, %v2899_v9 }
 0x308   : > { %v2902_v19 = vmul.f32 %v2898_v2, %v2897_v12  ;;  %v2905_v20 = vadd.f32 %v4089_v61, %v2901_v13 }
 0x309   : > { %v2904_v23 = vadd.f32 %v4091_v62, %v2900_v16  ;;  %v2925_v24 = vmul.f32 %v2923_v11, %v2903_v17 }
 0x30a   : > { %v2906_v26 = vadd.f32 %v4093_v63, %v2902_v19  ;;  %v2927_v14 = vmul.f32 %v2923_v11, %v2905_v20 }
 0x30b   : > { %v2926_v28 = vmul.f32 %v2923_v11, %v2904_v23  ;;  %v2929_v29 = vadd.f32 %v2925_v24, %v2916_v22 }
 0x30c   : > { %v2928_v31 = vmul.f32 %v2923_v11, %v2906_v26  ;;  %v2931_v32 = vadd.f32 %v2927_v14, %v2918_v25 }
 0x30d   : > { %v2930_v33 = vadd.f32 %v2926_v28, %v2917_v27  ;;  %2933 = vst [vmem:[%s464_s22] sm:$0xff] %v2929_v29 }
 0x30e   : > { %v2932_v34 = vadd.f32 %v2928_v31, %v2919_v30  ;;  %2935 = vst [vmem:[%s464_s22 + $0x10] sm:$0xff] %v2931_v32 }
 0x30f   : > { %2934 = vst [vmem:[%s464_s22 + $0x8] sm:$0xff] %v2930_v33 }
 0x310   : > { %2936 = vst [vmem:[%s464_s22 + $0x18] sm:$0xff] %v2932_v34 }
 0x311   : > { %4291 = shalt.err (!%p4288_p7)
}
 0x312   : > { %s4292_s23 = scalar_lea.hbm %s5086_s11, 512  ;;  %s4296_s29 = scalar_lea.hbm %s5199_s15, 1024 }
 0x313   : > { %p4293_p13 = scmp.ne.s32.totalorder %s5086_s11, %s4292_s23  ;;  %p4297_p12 = scmp.lt.u32.totalorder %s5086_s11, %s5199_s15 }
 0x314   : > { %p4298_p8 = scmp.lt.u32.totalorder %s4296_s29, %s4292_s23  ;;  %p4300_p10 = scmp.lt.u32.totalorder %s4292_s23, %s5086_s11 }
 0x315   : > { %p4294_p3 = pnand %p4293_p13, %p5200_p1 }
 0x316   : > { %p4299_p9 = por %p4298_p8, %p4297_p12 }
 0x317   : > { %p4295_p6 = pneg %p4294_p3 }
 0x318   : > { %p4301_p0 = por %p4300_p10, %p4299_p9 }
 0x31a   : > { %p4302_p5 = pnand %p4301_p0, %p4295_p6 }
 0x31c   : > { %4305 = shalt.err (!%p4302_p5)
}
 0x31d   : > { %3518 = dma.vmem_to_hbm [thread:$0]  (%p5200_p1), %s5088_s25, 512, %s5086_s11, %s2938_s0  }
 0x31e PF: > { %s5201_s12 = sld [smem:[#allocation21_spill]]  ;;  %s5202_s19 = sld [smem:[#allocation26_spill]] }
 0x31f   : > { %p5204_p11 = scmp.ge.s32.totalorder %s4360_s10, 2 }
 0x324   : > { %s2964_s17 = sand.u32 1, %s5201_s12   ;;  %p5203_p4 = scmp.ne.s32.totalorder %s5202_s19, 0 }
 0x325   : > { %s2965_s26 = scalar_lea.sflag [#allocation5], %s2964_s17 }
 0x326   : > { %p3541_p2 = pnand %p5204_p11, %p5203_p4 }
 0x328   : > { %4343 = dma.done.wait (!%p3541_p2), %s2965_s26, 512  }
 0x329   : > { %4345 = vsyncadd (!%p3541_p2), %s2965_s26, 4294966784  ;;  %s5205_s10 = sld [smem:[#allocation23_spill]]  ;;  %s5206_s27 = sld [smem:[#allocation22_spill]] }
 0x32a   : > { %s5207_s9 = sld [smem:[#allocation24_spill]]  ;;  %s5208_s29 = smov %s4352_s30 }
 0x32f   : > { %p29_p7 = scmp.ge.s32.totalorder %s5205_s10, 4   ;;  %s5209_s30 = smov %s5206_s27 }
 0x331   :  { %31 = sbr.rel (!%p29_p7) target bundleno = 16 (0x10), region = 143 }
 0x338   :  { %2970 = vsyncpa [#allocation4], 1 }
 0x339   :  { %2972 = vsyncpa [#allocation4 + $0x1], 1 }
 0x33a   :  { %2973 = vsyncpa [#allocation7], 1 }
 0x33b   :  { %2975 = vsyncpa [#allocation7 + $0x1], 1 }
 0x33c   :  { %2976 = vsyncpa [#allocation10], 1 }
 0x33d   :  { %2978 = vsyncpa [#allocation10 + $0x1], 1 }
 0x33e   :  { %2979 = vsyncpa [#allocation13], 1 }
 0x33f   :  { %2981 = vsyncpa [#allocation13 + $0x1], 1 }
 0x340   :  { %2982 = vsyncpa [#allocation5], 1 }
 0x341   :  { %2984 = vsyncpa [#allocation5 + $0x1], 1 }

</bundles_post_ra>
